<compile_context>
chip_gen: v6e
topology: v6e:2x2x1
jax: 0.10.0
libtpu: 0.0.40
codegen_flags: <defaults>
</compile_context>

<pallas_src>
import functools

import jax
import jax.numpy as jnp
from jax import lax
from jax.experimental import pallas as pl
from jax.experimental.pallas import tpu as pltpu

D_IN = 28 * 28   # 784
HIDDEN = 32
BATCH = 256      # example batch for the self-test
TILE_M = 128     # batch tile per grid step (128 good on v5e; 256 on v6e/v7x)


def _round_up(x, m):
    return ((x + m - 1) // m) * m


def _ae_loss_kernel(x_ref, w1_ref, b1_ref, w2_ref, b2_ref, part_ref,
                    *, tile_m, valid_rows, masked):
    """One batch tile: encode -> decode -> per-column partial sum of squared error.

    x_ref:   (tile_m, 784) f32 or bf16  VMEM
    w1_ref:  (784, H)      f32 or bf16  VMEM (resident across grid)
    b1_ref:  (1, H)        f32          VMEM (resident)
    w2_ref:  (H, 784)      f32 or bf16  VMEM (resident)
    b2_ref:  (1, 784)      f32          VMEM (resident)
    part_ref:(1, 1, 784)   f32          VMEM  -- lane-dense partial-sum row
    """
    x = x_ref[...]                              # (tile_m, 784)
    xf = x.astype(jnp.float32)                  # f32 elementwise path

    # encoder: Linear(784 -> H) (+ Identity activation); MXU, f32 accumulate
    h = jnp.dot(x, w1_ref[...], preferred_element_type=jnp.float32)
    h = h + b1_ref[...]                         # broadcast (1, H), f32

    # decoder: Linear(H -> 784); cast activation back to the matmul dtype
    out = jnp.dot(h.astype(w2_ref.dtype), w2_ref[...],
                  preferred_element_type=jnp.float32)
    out = out + b2_ref[...]                     # broadcast (1, 784), f32

    # squared error, f32
    diff = xf - out
    sq = diff * diff

    if masked:
        # zero out contributions from zero-padded batch rows (static flag)
        row = (pl.program_id(0) * tile_m
               + lax.broadcasted_iota(jnp.int32, (tile_m, 1), 0))
        sq = jnp.where(row < valid_rows, sq, 0.0)

    # Per-block column partial sums -> (1, 784) lane-dense output row.
    # (If the cross-sublane reduce ever binds on the XLU at large tiles, this
    #  can be swapped for a dot-with-ones on the otherwise idle MXU.)
    part_ref[...] = jnp.sum(sq, axis=0, keepdims=True).reshape(part_ref.shape)


def autoencoder_forward(x, w1, b1, w2, b2, *, tile_m=TILE_M,
                        matmul_dtype=jnp.bfloat16):
    """x: (B, 1, 28, 28) f32 -> scalar MSE loss (f32).

    matmul_dtype: dtype used for x / w1 / w2 and the MXU matmuls
                  (bf16 halves DMA bytes; accumulation/elementwise stay f32).
    """
    b = x.shape[0]
    x_flat = x.reshape(b, D_IN).astype(jnp.float32)

    # Pick the batch tile; pad the batch to a multiple of it if needed.
    tm = min(tile_m, _round_up(b, 8))
    b_pad = _round_up(b, tm)
    n_blocks = b_pad // tm
    masked = b_pad != b
    if masked:
        x_flat = jnp.pad(x_flat, ((0, b_pad - b), (0, 0)))

    x_in = x_flat.astype(matmul_dtype)
    w1_c = w1.astype(matmul_dtype)
    w2_c = w2.astype(matmul_dtype)
    b1_2d = b1.reshape(1, -1).astype(jnp.float32)
    b2_2d = b2.reshape(1, -1).astype(jnp.float32)

    kernel = functools.partial(_ae_loss_kernel, tile_m=tm, valid_rows=b,
                               masked=masked)

    itemsize = jnp.dtype(matmul_dtype).itemsize
    cost = pl.CostEstimate(
        flops=4 * b_pad * D_IN * HIDDEN,        # two (M,784)x(784,32)-class matmuls
        transcendentals=0,
        bytes_accessed=(b_pad * D_IN * itemsize                 # x
                        + (D_IN * HIDDEN + HIDDEN * D_IN) * itemsize  # w1, w2
                        + (HIDDEN + D_IN) * 4                   # biases
                        + n_blocks * D_IN * 4),                 # partial sums
    )

    partials = pl.pallas_call(
        kernel,
        out_shape=jax.ShapeDtypeStruct((n_blocks, 1, D_IN), jnp.float32),
        grid_spec=pltpu.PrefetchScalarGridSpec(
            num_scalar_prefetch=0,
            grid=(n_blocks,),
            in_specs=[
                pl.BlockSpec((tm, D_IN), lambda i: (i, 0)),       # x tile
                pl.BlockSpec((D_IN, HIDDEN), lambda i: (0, 0)),   # w1 (resident)
                pl.BlockSpec((1, HIDDEN), lambda i: (0, 0)),      # b1 (resident)
                pl.BlockSpec((HIDDEN, D_IN), lambda i: (0, 0)),   # w2 (resident)
                pl.BlockSpec((1, D_IN), lambda i: (0, 0)),        # b2 (resident)
            ],
            out_specs=pl.BlockSpec((1, 1, D_IN), lambda i: (i, 0, 0)),
        ),
        compiler_params=pltpu.CompilerParams(
            dimension_semantics=("parallel",),   # independent per-block outputs
        ),
        cost_estimate=cost,
    )(x_in, w1_c, b1_2d, w2_c, b2_2d)

    # Final mean over all B*784 elements (padded rows contribute zero).
    return jnp.sum(partials) / jnp.float32(b * D_IN)


def init_params(key, hidden=HIDDEN):
    """Deterministic PyTorch-style Linear init: U(-1/sqrt(fan_in), 1/sqrt(fan_in)).

    Weights stored as (in_features, out_features)."""
    k1, k2, k3, k4 = jax.random.split(key, 4)
    bound1 = 1.0 / jnp.sqrt(jnp.float32(D_IN))
    bound2 = 1.0 / jnp.sqrt(jnp.float32(hidden))
    w1 = jax.random.uniform(k1, (D_IN, hidden), jnp.float32, -bound1, bound1)
    b1 = jax.random.uniform(k2, (hidden,), jnp.float32, -bound1, bound1)
    w2 = jax.random.uniform(k3, (hidden, D_IN), jnp.float32, -bound2, bound2)
    b2 = jax.random.uniform(k4, (D_IN,), jnp.float32, -bound2, bound2)
    return w1, b1, w2, b2


def reference_forward(x, w1, b1, w2, b2):
    """Pure-JAX f32 reference (matches the PyTorch module in eval mode)."""
    xf = x.reshape(x.shape[0], D_IN).astype(jnp.float32)
    h = xf @ w1 + b1
    out = h @ w2 + b2
    return jnp.mean((xf - out) ** 2)


if __name__ == "__main__":
    key = jax.random.PRNGKey(0)
    k_x, k_p = jax.random.split(key)
    w1, b1, w2, b2 = init_params(k_p)

    # Case 1: batched (grid=(2,)), bf16 matmul path (main optimized config).
    x = jax.random.uniform(k_x, (BATCH, 1, 28, 28), jnp.float32)
    loss_bf16 = autoencoder_forward(x, w1, b1, w2, b2,
                                    matmul_dtype=jnp.bfloat16)
    jax.block_until_ready(loss_bf16)
    ref = reference_forward(x, w1, b1, w2, b2)
    assert jnp.allclose(loss_bf16, ref, rtol=2e-2, atol=2e-3), (loss_bf16, ref)

    # Case 2: same batch, f32 path -> tight tolerance vs. f32 reference.
    loss_f32 = autoencoder_forward(x, w1, b1, w2, b2,
                                   matmul_dtype=jnp.float32)
    jax.block_until_ready(loss_f32)
    assert jnp.allclose(loss_f32, ref, rtol=1e-5, atol=1e-6), (loss_f32, ref)

    # Case 3: batch not a multiple of the tile -> exercises pad + mask path.
    x_odd = jax.random.uniform(k_x, (200, 1, 28, 28), jnp.float32)
    loss_odd = autoencoder_forward(x_odd, w1, b1, w2, b2,
                                   matmul_dtype=jnp.float32)
    jax.block_until_ready(loss_odd)
    ref_odd = reference_forward(x_odd, w1, b1, w2, b2)
    assert jnp.allclose(loss_odd, ref_odd, rtol=1e-5, atol=1e-6), (loss_odd, ref_odd)

    print("KERNEL_OK")
</pallas_src>

<mosaic_0001>
module attributes {stable_mosaic.version = 11 : i64} {
  func.func @_ae_loss_kernel(%arg0: i32, %arg1: memref<128x784xbf16, #tpu.memory_space<vmem>>, %arg2: memref<784x32xbf16, #tpu.memory_space<vmem>>, %arg3: memref<1x32xf32, #tpu.memory_space<vmem>>, %arg4: memref<32x784xbf16, #tpu.memory_space<vmem>>, %arg5: memref<1x784xf32, #tpu.memory_space<vmem>>, %arg6: memref<1x1x784xf32, #tpu.memory_space<vmem>>) attributes {dimension_semantics = [#tpu.dimension_semantics<parallel>], iteration_bounds = array<i64: 2>, scalar_prefetch = 0 : i64, scratch_operands = 0 : i64, tpu.core_type = #tpu.core_type<tc>, window_params = [{transform_indices = @transform_0, window_bounds = array<i64: 128, 784>}, {pipeline_mode = #tpu.pipeline_mode<synchronous>, transform_indices = @transform_1, window_bounds = array<i64: 784, 32>}, {pipeline_mode = #tpu.pipeline_mode<synchronous>, transform_indices = @transform_2, window_bounds = array<i64: 1, 32>}, {pipeline_mode = #tpu.pipeline_mode<synchronous>, transform_indices = @transform_3, window_bounds = array<i64: 32, 784>}, {pipeline_mode = #tpu.pipeline_mode<synchronous>, transform_indices = @transform_4, window_bounds = array<i64: 1, 784>}, {transform_indices = @transform_5, window_bounds = array<i64: 1, 1, 784>}]} {
    %c0 = arith.constant 0 : index
    %c0_0 = arith.constant 0 : index
    %0 = vector.load %arg1[%c0, %c0_0] : memref<128x784xbf16, #tpu.memory_space<vmem>>, vector<128x784xbf16>
    %1 = arith.extf %0 : vector<128x784xbf16> to vector<128x784xf32>
    %c0_1 = arith.constant 0 : index
    %c0_2 = arith.constant 0 : index
    %2 = vector.load %arg2[%c0_1, %c0_2] : memref<784x32xbf16, #tpu.memory_space<vmem>>, vector<784x32xbf16>
    %cst = arith.constant dense<0.000000e+00> : vector<128x32xf32>
    %3 = tpu.matmul %0, %2, %cst {dimension_numbers = #tpu.dot_dimension_numbers<[1], [0], [0], [1], [0, 0, 1, 1], [], []>} : vector<128x784xbf16>, vector<784x32xbf16>, vector<128x32xf32> -> vector<128x32xf32>
    %c0_3 = arith.constant 0 : index
    %c0_4 = arith.constant 0 : index
    %4 = vector.load %arg3[%c0_3, %c0_4] : memref<1x32xf32, #tpu.memory_space<vmem>>, vector<1x32xf32>
    %5 = vector.broadcast %4 : vector<1x32xf32> to vector<128x32xf32>
    %6 = arith.addf %3, %5 : vector<128x32xf32>
    %7 = arith.truncf %6 : vector<128x32xf32> to vector<128x32xbf16>
    %c0_5 = arith.constant 0 : index
    %c0_6 = arith.constant 0 : index
    %8 = vector.load %arg4[%c0_5, %c0_6] : memref<32x784xbf16, #tpu.memory_space<vmem>>, vector<32x784xbf16>
    %cst_7 = arith.constant dense<0.000000e+00> : vector<128x784xf32>
    %9 = tpu.matmul %7, %8, %cst_7 {dimension_numbers = #tpu.dot_dimension_numbers<[1], [0], [0], [1], [0, 0, 1, 1], [], []>} : vector<128x32xbf16>, vector<32x784xbf16>, vector<128x784xf32> -> vector<128x784xf32>
    %c0_8 = arith.constant 0 : index
    %c0_9 = arith.constant 0 : index
    %10 = vector.load %arg5[%c0_8, %c0_9] : memref<1x784xf32, #tpu.memory_space<vmem>>, vector<1x784xf32>
    %11 = vector.broadcast %10 : vector<1x784xf32> to vector<128x784xf32>
    %12 = arith.addf %9, %11 : vector<128x784xf32>
    %13 = arith.subf %1, %12 : vector<128x784xf32>
    %14 = arith.mulf %13, %13 : vector<128x784xf32>
    %cst_10 = arith.constant dense<0.000000e+00> : vector<784xf32>
    %15 = vector.multi_reduction <add>, %14, %cst_10 [0] : vector<128x784xf32> to vector<784xf32>
    %16 = vector.shape_cast %15 : vector<784xf32> to vector<1x784xf32>
    %17 = vector.shape_cast %16 : vector<1x784xf32> to vector<1x1x784xf32>
    %c0_11 = arith.constant 0 : index
    %c0_12 = arith.constant 0 : index
    %c0_13 = arith.constant 0 : index
    %18 = vector.load %arg6[%c0_11, %c0_12, %c0_13] : memref<1x1x784xf32, #tpu.memory_space<vmem>>, vector<1x1x784xf32>
    tpu.vector_store %arg6[%c0_11, %c0_12, %c0_13], %17 {strides = array<i32>} : memref<1x1x784xf32, #tpu.memory_space<vmem>>, vector<1x1x784xf32>,
    return
  }
  func.func @transform_0(%arg0: i32) -> (i32, i32) {
    %c0_i32 = arith.constant 0 : i32
    %c0_i32_0 = arith.constant 0 : i32
    return %arg0, %c0_i32 : i32, i32
  }
  func.func @transform_1(%arg0: i32) -> (i32, i32) {
    %c0_i32 = arith.constant 0 : i32
    %c0_i32_0 = arith.constant 0 : i32
    %c0_i32_1 = arith.constant 0 : i32
    return %c0_i32, %c0_i32_0 : i32, i32
  }
  func.func @transform_2(%arg0: i32) -> (i32, i32) {
    %c0_i32 = arith.constant 0 : i32
    %c0_i32_0 = arith.constant 0 : i32
    %c0_i32_1 = arith.constant 0 : i32
    return %c0_i32, %c0_i32_0 : i32, i32
  }
  func.func @transform_3(%arg0: i32) -> (i32, i32) {
    %c0_i32 = arith.constant 0 : i32
    %c0_i32_0 = arith.constant 0 : i32
    %c0_i32_1 = arith.constant 0 : i32
    return %c0_i32, %c0_i32_0 : i32, i32
  }
  func.func @transform_4(%arg0: i32) -> (i32, i32) {
    %c0_i32 = arith.constant 0 : i32
    %c0_i32_0 = arith.constant 0 : i32
    %c0_i32_1 = arith.constant 0 : i32
    return %c0_i32, %c0_i32_0 : i32, i32
  }
  func.func @transform_5(%arg0: i32) -> (i32, i32, i32) {
    %c0_i32 = arith.constant 0 : i32
    %c0_i32_0 = arith.constant 0 : i32
    %c0_i32_1 = arith.constant 0 : i32
    return %arg0, %c0_i32, %c0_i32_0 : i32, i32, i32
  }
}

</mosaic_0001>

<bundles_post_ra>
// kernel: tpu_custom_call.1
= control target key start
LH: loop header
LB: loop body
LE: loop exit
PB: predicated region body
PF: predicated region fallthrough
CT: control target
= control target key end

     0   :  { %10 = vsyncpa [#allocation3], 0  ;;  %s4662_s0 = inlined_call_operand.vmem [shape: bf16[256,784], index: 0, kind: input, shape index: {}]   ;;  %s4663_s1 = inlined_call_operand.vmem [shape: bf16[784,32], index: 1, kind: input, shape index: {}]   ;;  %s4664_s2 = inlined_call_operand.vmem [shape: f32[1,32], index: 2, kind: input, shape index: {}]   ;;  %s4665_s3 = inlined_call_operand.vmem [shape: bf16[32,784], index: 3, kind: input, shape index: {}]   ;;  %s4666_s4 = inlined_call_operand.vmem [shape: f32[1,784], index: 4, kind: input, shape index: {}]   ;;  %s4667_s5 = inlined_call_operand.hbm [shape: f32[2,1,784], index: 5, kind: output, shape index: {}]  }
   0x1   :  { %12 = vsyncpa [#allocation3 + $0x1], 0  ;;  %s3326_s18 = smov 0   ;;  %s3328_s19 = smov 0  }
   0x2   :  { %s3330_s20 = smov 0   ;;  %s3332_s21 = smov 0  }
   0x3 LB: > { %s3347_s22 = sadd.s32 4294967295, %s3291_s21   ;;  %s2613_s23 = sadd.s32 4294967294, %s3291_s21   ;;  %s3291_s21 = sphi %s3332_s21, %s4960_s21   ;;  %s3287_s20 = sphi %s3330_s20, %s4959_s20   ;;  %s3283_s19 = sphi %s3328_s19, %s4958_s19   ;;  %s3279_s18 = sphi %s3326_s18, %s4957_s18  }
   0x4   : > { %s3351_s24 = sadd.s32 1, %s3291_s21   ;;  %s135_s25 = sadd.s32 1, %s3287_s20 }
   0x5   : > { %s132_s26 = ssub.s32 %s3291_s21, %s3351_s24  ;;  %p145_p0 = scmp.ne.s32.totalorder %s3287_s20, %s3283_s19 }
   0x6   : > { %p133_p1 = scmp.eq.s32.totalorder %s132_s26, 0  ;;  %p146_p2 = scmp.eq.s32.totalorder %s3347_s22, 1 }
   0x7   : > { %p151_p3 = scmp.ne.s32.totalorder %s3283_s19, %s3279_s18  ;;  %p152_p4 = scmp.eq.s32.totalorder %s2613_s23, 1 }
   0x8   : > { %s3362_s27 = scalar_select %p133_p1, %s3287_s20, %s135_s25  }
   0x9   : > { %p3364_p5 = por %p146_p2, %p145_p0  ;;  %p3368_p6 = por %p152_p4, %p151_p3 }
   0xa   : > { %p2616_p7 = scmp.ge.s32.totalorder %s3291_s21, 1  ;;  %p192_p8 = scmp.lt.s32.totalorder %s3291_s21, 3 }
   0xc   : > { %p193_p9 = pnand %p2616_p7, %p192_p8 }
   0xe   : > { %196 = sbr.rel (%p193_p9) target bundleno = 709 (0x2c5), region = 40 }
  0x13   : > { %v3075_v0 = vld [vmem:[%s4663_s1 + $0x78] sm:$0xff]   ;;  %v3079_v4 = vld [vmem:[%s4663_s1 + $0x70] sm:$0xff]   ;;  %v3083_v8 = vld [vmem:[%s4663_s1 + $0x68] sm:$0xff]   ;;  %s2617_s25 = sshll.u32 %s3347_s22, 4  ;;  %vm1084_vm0 = vcmask 130048   ;;  %vm1630_vm1 = vcmask 261120  }
  0x14   : > { %v3076_v1 = vld [vmem:[%s4663_s1 + $0xf8] sm:$0xff]   ;;  %2782 = vmatprep.subr.bf16.mxu0 %v3075_v0  ;;  %v3080_v5 = vld [vmem:[%s4663_s1 + $0xf0] sm:$0xff]   ;;  %v3084_v9 = vld [vmem:[%s4663_s1 + $0xe8] sm:$0xff]   ;;  %p222_p10 = scmp.lt.s32.totalorder %s2617_s25, 31  ;;  %s3033_s23 = smul.u32 112, %s3347_s22 }
  0x15   : > { %v3077_v2 = vld [vmem:[%s4663_s1 + $0x38] sm:$0xff]   ;;  %2846 = vmatprep.subr.bf16.mxu1 %v3076_v1  ;;  %v3081_v6 = vld [vmem:[%s4663_s1 + $0x30] sm:$0xff]   ;;  %v3085_v10 = vld [vmem:[%s4663_s1 + $0x28] sm:$0xff]   ;;  %s3295_s22 = smov [#allocation2]  }
  0x16   : > { %v3078_v3 = vld [vmem:[%s4663_s1 + $0xb8] sm:$0xff]   ;;  %2783 = vmatpush3.bf16.msra.mxu0 %v3077_v2  ;;  %v3082_v7 = vld [vmem:[%s4663_s1 + $0xb0] sm:$0xff]   ;;  %v3086_v11 = vld [vmem:[%s4663_s1 + $0xa8] sm:$0xff]   ;;  %s4962_s25 = smov (!%p222_p10, %s2617_s25), 31  ;;  %s2552_s8 = scalar_lea.hbm %s4667_s5, %s3033_s23 }
  0x17   : > { %2847 = vmatpush3.bf16.msra.mxu1 %v3078_v3  ;;  %2784 = vmatprep.subr.bf16.mxu0 %v3079_v4  ;;  %v3087_v12 = vld [vmem:[%s4663_s1 + $0x60] sm:$0xff]   ;;  %v3091_v16 = vld [vmem:[%s4663_s1 + $0x58] sm:$0xff]   ;;  %v3095_v20 = vld [vmem:[%s4663_s1 + $0x50] sm:$0xff]   ;;  %s3032_s11 = smul.u32 28, %s4962_s25 }
  0x18   : > { %2848 = vmatprep.subr.bf16.mxu1 %v3080_v5  ;;  %v3088_v13 = vld [vmem:[%s4663_s1 + $0xe0] sm:$0xff]   ;;  %v3092_v17 = vld [vmem:[%s4663_s1 + $0xd8] sm:$0xff]   ;;  %v3096_v21 = vld [vmem:[%s4663_s1 + $0xd0] sm:$0xff]  }
  0x19   : > { %v3089_v14 = vld [vmem:[%s4663_s1 + $0x20] sm:$0xff]   ;;  %v3093_v18 = vld [vmem:[%s4663_s1 + $0x18] sm:$0xff]   ;;  %v3097_v22 = vld [vmem:[%s4663_s1 + $0x10] sm:$0xff]   ;;  %s3468_s6 = scalar_lea.vmem %s4662_s0, %s3032_s11  ;;  %s3235_s11 = sshll.u32 %s3295_s22, 4  ;;  %s3236_s11 = int_to_ptr.vmem [resolvable:$false] %s3235_s11 }
  0x1a   : > { %2785 = vmatpush3.bf16.msra.mxu0 %v3081_v6  ;;  %v3090_v15 = vld [vmem:[%s4663_s1 + $0xa0] sm:$0xff]   ;;  %v3094_v19 = vld [vmem:[%s4663_s1 + $0x98] sm:$0xff]   ;;  %v3098_v23 = vld [vmem:[%s4663_s1 + $0x90] sm:$0xff]   ;;  %s3237_s12 = scalar_lea.vmem %s3236_s11, 224 }
  0x1b   : > { %2849 = vmatpush3.bf16.msra.mxu1 %v3082_v7  ;;  %2786 = vmatprep.subr.bf16.mxu0 %v3083_v8  ;;  %v3099_v24 = vld [vmem:[%s4663_s1 + $0x48] sm:$0xff]   ;;  %v3103_v28 = vld [vmem:[%s4663_s1 + $0x40] sm:$0xff]   ;;  %v3111_v40 = vld [vmem:[%s4663_s1 + $0x178] sm:$0xff]  }
  0x1c   : > { %2850 = vmatprep.subr.bf16.mxu1 %v3084_v9  ;;  %v3100_v25 = vld [vmem:[%s4663_s1 + $0xc8] sm:$0xff]   ;;  %v3104_v29 = vld [vmem:[%s4663_s1 + $0xc0] sm:$0xff]   ;;  %v3112_v41 = vld [vmem:[%s4663_s1 + $0x138] sm:$0xff]  }
  0x1d   : > { %v3101_v26 = vld [vmem:[%s4663_s1 + $0x8] sm:$0xff]   ;;  %v3105_v30 = vld [vmem:[%s4663_s1] sm:$0xff]   ;;  %v237_v43 = vld [vmem:[%s3468_s6 + $0x38] sm:$0xff] }
  0x1e   : > { %2787 = vmatpush3.bf16.msra.mxu0 %v3085_v10  ;;  %v3102_v27 = vld [vmem:[%s4663_s1 + $0x88] sm:$0xff]   ;;  %v3106_v31 = vld [vmem:[%s4663_s1 + $0x80] sm:$0xff]   ;;  %v241_v44 = vld [vmem:[%s3468_s6 + $0x54] sm:$0xff] }
  0x1f   : > { %2851 = vmatpush3.bf16.msra.mxu1 %v3086_v11  ;;  %2788 = vmatprep.subr.bf16.mxu0 %v3087_v12  ;;  %v229_v32 = vld [vmem:[%s3468_s6] sm:$0xff]  ;;  %v230_v34 = vld [vmem:[%s3468_s6 + $0x8] sm:$0xff]  ;;  %v2628_v45 = vcombine.high %v237_v43, %v241_v44  ;;  %v3118_v49 = vld [vmem:[%s4663_s1 + $0x170] sm:$0xff]   ;;  %v2627_v52 = vcombine.low %v237_v43, %v241_v44 }
  0x20   : > { %2852 = vmatprep.subr.bf16.mxu1 %v3088_v13  ;;  %v233_v33 = vld [vmem:[%s3468_s6 + $0x1c] sm:$0xff]  ;;  %v234_v36 = vld [vmem:[%s3468_s6 + $0x24] sm:$0xff]  ;;  %v3119_v50 = vld [vmem:[%s4663_s1 + $0x130] sm:$0xff]  }
  0x21   : > { %v2621_v35 = vcombine.high %v229_v32, %v233_v33  ;;  %v2620_v37 = vcombine.low %v229_v32, %v233_v33  ;;  %v2623_v38 = vcombine.high %v230_v34, %v234_v36  ;;  %v2622_v39 = vcombine.low %v230_v34, %v234_v36  ;;  %v3113_v42 = vld [vmem:[%s4663_s1 + $0x180] sm:$0xff]   ;;  %v245_v51 = vld [vmem:[%s3468_s6 + $0x70] sm:$0xff]  ;;  %v246_v54 = vld [vmem:[%s3468_s6 + $0x78] sm:$0xff] }
  0x22   : > { %2789 = vmatpush3.bf16.msra.mxu0 %v3089_v14  ;;  %v238_v46 = vld [vmem:[%s3468_s6 + $0x40] sm:$0xff]  ;;  %v249_v53 = vld [vmem:[%s3468_s6 + $0x8c] sm:$0xff]  ;;  %v250_v55 = vld [vmem:[%s3468_s6 + $0x94] sm:$0xff] }
  0x23   : > { %2853 = vmatpush3.bf16.msra.mxu1 %v3090_v15  ;;  %2790 = vmatprep.subr.bf16.mxu0 %v3091_v16  ;;  %v242_v47 = vld [vmem:[%s3468_s6 + $0x5c] sm:$0xff]  ;;  %v2635_v57 = vcombine.high %v245_v51, %v249_v53  ;;  %v3124_v58 = vld [vmem:[%s4663_s1 + $0x168] sm:$0xff]   ;;  %v2637_v59 = vcombine.high %v246_v54, %v250_v55  ;;  %v254_v1 = vld [vmem:[%s3468_s6 + $0xb0] sm:$0xff]  ;;  %v2634_v3 = vcombine.low %v245_v51, %v249_v53 }
  0x24   : > { %2854 = vmatprep.subr.bf16.mxu1 %v3092_v17  ;;  %1141 = vmatprep.mubr.bf16.mxu0 %v2621_v35  ;;  %v2630_v48 = vcombine.high %v238_v46, %v242_v47  ;;  %v2629_v56 = vcombine.low %v238_v46, %v242_v47  ;;  %v3125_v60 = vld [vmem:[%s4663_s1 + $0x128] sm:$0xff]   ;;  %v3130_v61 = vld [vmem:[%s4663_s1 + $0x160] sm:$0xff]   ;;  %v3136_v4 = vld [vmem:[%s4663_s1 + $0x158] sm:$0xff]   ;;  %v2636_v5 = vcombine.low %v246_v54, %v250_v55 }
  0x25   : > { %1238 = vmatprep.mubr.bf16.mxu1 %v2623_v38  ;;  %v253_v62 = vld [vmem:[%s3468_s6 + $0xa8] sm:$0xff]  ;;  %v3131_v0 = vld [vmem:[%s4663_s1 + $0x120] sm:$0xff]   ;;  %v3137_v8 = vld [vmem:[%s4663_s1 + $0x118] sm:$0xff]  }
  0x26   : > { %2791 = vmatpush3.bf16.msra.mxu0 %v3093_v18  ;;  %v257_v63 = vld [vmem:[%s3468_s6 + $0xc4] sm:$0xff]  ;;  %v258_v2 = vld [vmem:[%s3468_s6 + $0xcc] sm:$0xff]  ;;  %v265_v11 = vld [vmem:[%s3468_s6 + $0xfc] sm:$0xff] }
  0x27   : > { %2855 = vmatpush3.bf16.msra.mxu1 %v3094_v19  ;;  %2792 = vmatprep.subr.bf16.mxu0 %v3095_v20  ;;  %v2642_v6 = vcombine.high %v253_v62, %v257_v63  ;;  %v2644_v7 = vcombine.high %v254_v1, %v258_v2  ;;  %v3142_v9 = vld [vmem:[%s4663_s1 + $0x150] sm:$0xff]   ;;  %v261_v10 = vld [vmem:[%s3468_s6 + $0xe0] sm:$0xff]  ;;  %v262_v12 = vld [vmem:[%s3468_s6 + $0xe8] sm:$0xff]  ;;  %v2641_v16 = vcombine.low %v253_v62, %v257_v63 }
  0x28   : > { %2856 = vmatprep.subr.bf16.mxu1 %v3096_v21  ;;  %v266_v13 = vld [vmem:[%s3468_s6 + $0x104] sm:$0xff]  ;;  %v3143_v14 = vld [vmem:[%s4663_s1 + $0x110] sm:$0xff]   ;;  %v2643_v17 = vcombine.low %v254_v1, %v258_v2  ;;  %v2649_v18 = vcombine.high %v261_v10, %v265_v11  ;;  %v3561_v33 = vld [vmem:[%s3468_s6 + $0x158] sm:$0xff] }
  0x29   : > { %v3148_v15 = vld [vmem:[%s4663_s1 + $0x148] sm:$0xff]   ;;  %v2651_v19 = vcombine.high %v262_v12, %v266_v13  ;;  %v3154_v21 = vld [vmem:[%s4663_s1 + $0x140] sm:$0xff]   ;;  %v3564_v34 = vld [vmem:[%s3468_s6 + $0x174] sm:$0xff] }
  0x2a   : > { %2793 = vmatpush3.bf16.msra.mxu0 %v3097_v22  ;;  %v3149_v20 = vld [vmem:[%s4663_s1 + $0x108] sm:$0xff]   ;;  %v269_v22 = vld [vmem:[%s3468_s6 + $0x118] sm:$0xff]  ;;  %4754 = vst [vmem:[#allocation6_spill] sm:$0xff] %v3564_v34  ;;  %v2665_v38 = vcombine.high %v3561_v33, %v3564_v34  ;;  %v2664_v44 = vcombine.low %v3561_v33, %v3564_v34  ;;  %v3592_v47 = vld [vmem:[%s3468_s6 + $0x10] sm:$0xff] }
  0x2b   : > { %2857 = vmatpush3.bf16.msra.mxu1 %v3098_v23  ;;  %2794 = vmatprep.subr.bf16.mxu0 %v3099_v24  ;;  %v273_v23 = vld [vmem:[%s3468_s6 + $0x134] sm:$0xff]  ;;  %v3155_v24 = vld [vmem:[%s4663_s1 + $0x100] sm:$0xff]   ;;  %v3558_v32 = vld [vmem:[%s3468_s6 + $0x16c] sm:$0xff]  ;;  %4759 = vst [vmem:[#allocation11_spill] sm:$0xff] %v3592_v47 }
  0x2c   : > { %2858 = vmatprep.subr.bf16.mxu1 %v3100_v25  ;;  %v3550_v25 = vld [vmem:[%s3468_s6 + $0x120] sm:$0xff]  ;;  %4753 = vst [vmem:[#allocation5_spill] sm:$0xff] %v3558_v32  ;;  %v2655_v35 = vcombine.low %v269_v22, %v273_v23  ;;  %v3612_v55 = vld [vmem:[%s3468_s6 + $0x50] sm:$0xf] }
  0x2d   : > { %4763 = vst [vmem:[#allocation15_spill] sm:$0xff] %v3612_v55  ;;  %v3640_v1 = vld [vmem:[%s3468_s6 + $0x80] sm:$0xff] }
  0x2e   : > { %2795 = vmatpush3.bf16.msra.mxu0 %v3101_v26  ;;  %v274_v26 = vld [vmem:[%s3468_s6 + $0x13c] sm:$0xff]  ;;  %4769 = vst [vmem:[#allocation21_spill] sm:$0xff] %v3640_v1 }
  0x2f   : > { %2859 = vmatpush3.bf16.msra.mxu1 %v3102_v27  ;;  %2796 = vmatprep.subr.bf16.mxu0 %v3103_v28  ;;  %v2648_v27 = vcombine.low %v261_v10, %v265_v11  ;;  %v2650_v28 = vcombine.low %v262_v12, %v266_v13  ;;  %v2657_v36 = vcombine.low %v3550_v25, %v274_v26  ;;  %v3644_v2 = vld [vmem:[%s3468_s6 + $0x9c] sm:$0xff]  ;;  %v3671_v12 = vld [vmem:[%s3468_s6 + $0xd4] sm:$0xff]  ;;  %v3675_v13 = vld [vmem:[%s3468_s6 + $0x130] sm:$0xf] }
  0x30   : > { %2860 = vmatprep.subr.bf16.mxu1 %v3104_v29  ;;  %v2656_v29 = vcombine.high %v269_v22, %v273_v23  ;;  %4770 = vst [vmem:[#allocation22_spill] sm:$0xff] %v3644_v2  ;;  %v3668_v11 = vld [vmem:[%s3468_s6 + $0xb8] sm:$0xff]  ;;  %4776 = vst [vmem:[#allocation28_spill] sm:$0xff] %v3671_v12  ;;  %v3699_v22 = vld [vmem:[%s3468_s6 + $0x10c] sm:$0xff] }
  0x31   : > { %4775 = vst [vmem:[#allocation27_spill] sm:$0xff] %v3668_v11  ;;  %4777 = vst [vmem:[#allocation29_spill] sm:$0xff] %v3675_v13  ;;  %v3703_v23 = vld [vmem:[%s3468_s6 + $0x1a0] sm:$0xf] }
  0x32   : > { %2797 = vmatpush3.bf16.msra.mxu0 %v3105_v30  ;;  %v2658_v30 = vcombine.high %v3550_v25, %v274_v26  ;;  %4782 = vst [vmem:[#allocation34_spill] sm:$0xff] %v3699_v22  ;;  %4783 = vst [vmem:[#allocation35_spill] sm:$0xff] %v3703_v23  ;;  %v2645_v26 = vcombine.low %v3668_v11, %v3671_v12 }
  0x33   : > { %2861 = vmatpush3.bf16.msra.mxu1 %v3106_v31  ;;  %2910 = vmatprep.subr.bf16.mxu0 %v3111_v40  ;;  %v3555_v31 = vld [vmem:[%s3468_s6 + $0x150] sm:$0xff]  ;;  %v3575_v40 = vld [vmem:[%s3468_s6 + $0x1a4] sm:$0xff] }
  0x34   : > { %2993 = vmatprep.subr.bf16.mxu1 %v3113_v42  ;;  %4756 = vst [vmem:[#allocation8_spill] sm:$0xff] %v3575_v40  ;;  %v2662_v43 = vcombine.low %v3555_v31, %v3558_v32 }
  0x35   : > { %1142 = vmatmul.mubr.bf16.vlgmr.msra.gmra.mxu0 %v2620_v37  ;;  %v2663_v37 = vcombine.high %v3555_v31, %v3558_v32 }
  0x36   : > { %1239 = vmatmul.mubr.bf16.vlgmr.msra.gmra.mxu1 %v2622_v39  ;;  %2911 = vmatpush3.bf16.msra.mxu0 %v3112_v41  ;;  %v3572_v39 = vld [vmem:[%s3468_s6 + $0x188] sm:$0xff]  ;;  %v3578_v41 = vld [vmem:[%s3468_s6 + $0x190] sm:$0xff] }
  0x37   : > { %2994 = vmatpush3.bf16.msra.mxu1 %v3113_v42  ;;  %1149 = vmatprep.mubr.bf16.mxu0 %v2628_v45  ;;  %4755 = vst [vmem:[#allocation7_spill] sm:$0xff] %v3572_v39  ;;  %4757 = vst [vmem:[#allocation9_spill] sm:$0xff] %v3578_v41  ;;  %v3581_v42 = vld [vmem:[%s3468_s6 + $0x1ac] sm:$0xff]  ;;  %v2670_v45 = vcombine.high %v3572_v39, %v3575_v40  ;;  %v2669_v51 = vcombine.low %v3572_v39, %v3575_v40 }
  0x38   : > { %1246 = vmatprep.mubr.bf16.mxu1 %v2630_v48  ;;  %2912 = vmatprep.subr.bf16.mxu0 %v3118_v49  ;;  %4758 = vst [vmem:[#allocation10_spill] sm:$0xff] %v3581_v42  ;;  %v2672_v46 = vcombine.high %v3578_v41, %v3581_v42  ;;  %v3595_v48 = vld [vmem:[%s3468_s6 + $0x2c] sm:$0xff]  ;;  %v3598_v49 = vld [vmem:[%s3468_s6 + $0x18] sm:$0xf] }
  0x39   : > { %4760 = vst [vmem:[#allocation12_spill] sm:$0xff] %v3595_v48  ;;  %4761 = vst [vmem:[#allocation13_spill] sm:$0xff] %v3598_v49  ;;  %v2625_v53 = vcombine.high %v3592_v47, %v3595_v48 }
  0x3a   : > { %2913 = vmatpush3.bf16.msra.mxu0 %v3119_v50  ;;  %v3601_v50 = vld [vmem:[%s3468_s6 + $0x34] sm:$0xf] }
  0x3b   : > { %2914 = vmatprep.subr.bf16.mxu0 %v3124_v58  ;;  %4762 = vst [vmem:[#allocation14_spill] sm:$0xff] %v3601_v50  ;;  %v2626_v54 = vcombine.low %v3598_v49, %v3601_v50  ;;  %v3622_v58 = vld [vmem:[%s3468_s6 + $0x64] sm:$0xff] }
  0x3c   : > { %4766 = vst [vmem:[#allocation18_spill] sm:$0xff] %v3622_v58 }
  0x3d   : > { %1150 = vmatmul.mubr.bf16.gmra.mxu0 %v2627_v52  ;;  %v2671_v52 = vcombine.low %v3578_v41, %v3581_v42 }
  0x3e   : > { %1247 = vmatmul.mubr.bf16.gmra.mxu1 %v2629_v56  ;;  %1157 = vmatprep.mubr.bf16.mxu0 %v2635_v57  ;;  %v3616_v56 = vld [vmem:[%s3468_s6 + $0x6c] sm:$0xf] }
  0x3f   : > { %1254 = vmatprep.mubr.bf16.mxu1 %v2637_v59  ;;  %2915 = vmatpush3.bf16.msra.mxu0 %v3125_v60  ;;  %4764 = vst [vmem:[#allocation16_spill] sm:$0xff] %v3616_v56  ;;  %v3619_v57 = vld [vmem:[%s3468_s6 + $0x48] sm:$0xff]  ;;  %v3628_v60 = vld [vmem:[%s3468_s6 + $0xa4] sm:$0xf]  ;;  %v2633_v62 = vcombine.low %v3612_v55, %v3616_v56 }
  0x40   : > { %2916 = vmatprep.subr.bf16.mxu0 %v3130_v61  ;;  %4765 = vst [vmem:[#allocation17_spill] sm:$0xff] %v3619_v57  ;;  %v3625_v59 = vld [vmem:[%s3468_s6 + $0x88] sm:$0xf]  ;;  %4768 = vst [vmem:[#allocation20_spill] sm:$0xff] %v3628_v60  ;;  %v2624_v61 = vcombine.low %v3592_v47, %v3595_v48  ;;  %v2632_v63 = vcombine.high %v3619_v57, %v3622_v58 }
  0x41   : > { %4767 = vst [vmem:[#allocation19_spill] sm:$0xff] %v3625_v59 }
  0x43   : > { %2917 = vmatpush3.bf16.msra.mxu0 %v3131_v0  ;;  %v2640_v0 = vcombine.low %v3625_v59, %v3628_v60 }
  0x44   : > { %2918 = vmatprep.subr.bf16.mxu0 %v3136_v4  ;;  %v3650_v4 = vld [vmem:[%s3468_s6 + $0xdc] sm:$0xf] }
  0x45   : > { %1158 = vmatmul.mubr.bf16.gmra.mxu0 %v2634_v3  ;;  %v3647_v3 = vld [vmem:[%s3468_s6 + $0xc0] sm:$0xf]  ;;  %4772 = vst [vmem:[#allocation24_spill] sm:$0xff] %v3650_v4 }
  0x46   : > { %1255 = vmatmul.mubr.bf16.gmra.mxu1 %v2636_v5  ;;  %1165 = vmatprep.mubr.bf16.mxu0 %v2642_v6  ;;  %4771 = vst [vmem:[#allocation23_spill] sm:$0xff] %v3647_v3  ;;  %v3653_v5 = vld [vmem:[%s3468_s6 + $0xf8] sm:$0xf]  ;;  %v3656_v6 = vld [vmem:[%s3468_s6 + $0x114] sm:$0xf] }
  0x47   : > { %1262 = vmatprep.mubr.bf16.mxu1 %v2644_v7  ;;  %2919 = vmatpush3.bf16.msra.mxu0 %v3137_v8  ;;  %4773 = vst [vmem:[#allocation25_spill] sm:$0xff] %v3653_v5  ;;  %4774 = vst [vmem:[#allocation26_spill] sm:$0xff] %v3656_v6  ;;  %v2631_v7 = vcombine.low %v3619_v57, %v3622_v58  ;;  %v2639_v8 = vcombine.high %v3640_v1, %v3644_v2 }
  0x48   : > { %2920 = vmatprep.subr.bf16.mxu0 %v3142_v9  ;;  %v2647_v9 = vcombine.low %v3647_v3, %v3650_v4  ;;  %v2654_v10 = vcombine.low %v3653_v5, %v3656_v6 }
  0x4b   : > { %2921 = vmatpush3.bf16.msra.mxu0 %v3143_v14  ;;  %v3678_v14 = vld [vmem:[%s3468_s6 + $0x14c] sm:$0xf] }
  0x4c   : > { %2922 = vmatprep.subr.bf16.mxu0 %v3148_v15  ;;  %4778 = vst [vmem:[#allocation30_spill] sm:$0xff] %v3678_v14  ;;  %v3681_v15 = vld [vmem:[%s3468_s6 + $0x168] sm:$0xf] }
  0x4d   : > { %1166 = vmatmul.mubr.bf16.gmra.mxu0 %v2641_v16  ;;  %4779 = vst [vmem:[#allocation31_spill] sm:$0xff] %v3681_v15  ;;  %v3684_v16 = vld [vmem:[%s3468_s6 + $0x184] sm:$0xf] }
  0x4e   : > { %1263 = vmatmul.mubr.bf16.gmra.mxu1 %v2643_v17  ;;  %1173 = vmatprep.mubr.bf16.mxu0 %v2649_v18  ;;  %4780 = vst [vmem:[#allocation32_spill] sm:$0xff] %v3684_v16  ;;  %v2638_v17 = vcombine.low %v3640_v1, %v3644_v2  ;;  %v2646_v18 = vcombine.high %v3668_v11, %v3671_v12 }
  0x4f   : > { %1270 = vmatprep.mubr.bf16.mxu1 %v2651_v19  ;;  %2923 = vmatpush3.bf16.msra.mxu0 %v3149_v20  ;;  %v2661_v19 = vcombine.low %v3675_v13, %v3678_v14  ;;  %v2668_v20 = vcombine.low %v3681_v15, %v3684_v16 }
  0x50   : > { %2924 = vmatprep.subr.bf16.mxu0 %v3154_v21  ;;  %v3695_v21 = vld [vmem:[%s3468_s6 + $0xf0] sm:$0xff] }
  0x51   : > { %4781 = vst [vmem:[#allocation33_spill] sm:$0xff] %v3695_v21 }
  0x53   : > { %2925 = vmatpush3.bf16.msra.mxu0 %v3155_v24  ;;  %v3706_v24 = vld [vmem:[%s3468_s6 + $0x1bc] sm:$0xf] }
  0x54   : > { %4784 = vst [vmem:[#allocation36_spill] sm:$0xff] %v3706_v24 }
  0x55   : > { %1174 = vmatmul.mubr.bf16.gmra.mxu0 %v2648_v27  ;;  %v2653_v27 = vcombine.high %v3695_v21, %v3699_v22 }
  0x56   : > { %1271 = vmatmul.mubr.bf16.gmra.mxu1 %v2650_v28  ;;  %1181 = vmatprep.mubr.bf16.mxu0 %v2656_v29  ;;  %v2675_v28 = vcombine.low %v3703_v23, %v3706_v24  ;;  %v3716_v29 = vld [vmem:[%s3468_s6 + $0x128] sm:$0xff] }
  0x57   : > { %1278 = vmatprep.mubr.bf16.mxu1 %v2658_v30  ;;  %4785 = vst [vmem:[#allocation37_spill] sm:$0xff] %v3716_v29  ;;  %v275_v30 = vld [vmem:[%s3468_s6 + $0x144] sm:$0xff] }
  0x5d   : > { %1182 = vmatmul.mubr.bf16.gmra.mxu0 %v2655_v35  ;;  %v2652_v35 = vcombine.low %v3695_v21, %v3699_v22 }
  0x5e   : > { %1279 = vmatmul.mubr.bf16.gmra.mxu1 %v2657_v36  ;;  %1189 = vmatprep.mubr.bf16.mxu0 %v2663_v37  ;;  %v2660_v36 = vcombine.high %v3716_v29, %v275_v30  ;;  %v279_v37 = vld [vmem:[%s3468_s6 + $0x160] sm:$0xff] }
  0x5f   : > { %1286 = vmatprep.mubr.bf16.mxu1 %v2665_v38  ;;  %v283_v38 = vld [vmem:[%s3468_s6 + $0x17c] sm:$0xff] }
  0x65   : > { %1190 = vmatmul.mubr.bf16.gmra.mxu0 %v2662_v43  ;;  %v2659_v43 = vcombine.low %v3716_v29, %v275_v30 }
  0x66   : > { %1287 = vmatmul.mubr.bf16.gmra.mxu1 %v2664_v44  ;;  %1197 = vmatprep.mubr.bf16.mxu0 %v2670_v45  ;;  %v2667_v44 = vcombine.high %v279_v37, %v283_v38  ;;  %v287_v45 = vld [vmem:[%s3468_s6 + $0x198] sm:$0xff] }
  0x67   : > { %1294 = vmatprep.mubr.bf16.mxu1 %v2672_v46  ;;  %v291_v46 = vld [vmem:[%s3468_s6 + $0x1b4] sm:$0xff] }
  0x6d   : > { %1198 = vmatmul.mubr.bf16.gmra.mxu0 %v2669_v51  ;;  %v2666_v51 = vcombine.low %v279_v37, %v283_v38 }
  0x6e   : > { %1295 = vmatmul.mubr.bf16.gmra.mxu1 %v2671_v52  ;;  %1335 = vmatprep.mubr.bf16.mxu0 %v2625_v53  ;;  %v2674_v52 = vcombine.high %v287_v45, %v291_v46  ;;  %v3180_v53 = vld [vmem:[%s4665_s3 + $0x40] ss:$28 sps:$4 sm:$0xff]  }
  0x6f   : > { %2995 = vmatprep.mubr.msk.bf16.mxu1 %vm1084_vm0, %v2626_v54  ;;  %v3182_v54 = vld [vmem:[%s4665_s3 + $0x44] ss:$28 sps:$4 sm:$0xff]  }
  0x70   : > { %1780 = vmatprep.subr.bf16.mxu0 %v3182_v54 }
  0x75   : > { %1336 = vmatmul.mubr.bf16.vlgmr.msra.gmra.mxu0 %v2624_v61  ;;  %v3183_v61 = vld [vmem:[%s4665_s3 + $0x38] ss:$28 sps:$4 sm:$0xff]  }
  0x76   : > { %2996 = vmatmul.mubr.msk.bf16.vlgmr.msra.gmra.mxu1 %vm1084_vm0, %v2633_v62  ;;  %1343 = vmatprep.mubr.bf16.mxu0 %v2632_v63  ;;  %v3185_v62 = vld [vmem:[%s4665_s3 + $0x3c] ss:$28 sps:$4 sm:$0xff]   ;;  %v2673_v63 = vcombine.low %v287_v45, %v291_v46 }
  0x77   : > { %2999 = vmatprep.mubr.msk.bf16.mxu1 %vm1084_vm0, %v2640_v0  ;;  %1781 = vmatpush1.bf16.msra.mxu0 %v3180_v53  ;;  %v3186_v0 = vld [vmem:[%s4665_s3] ss:$28 sps:$4 sm:$0xff]  }
  0x78   : > { %1667 = vmatprep.subr.bf16.mxu1 %v3185_v62 }
  0x79   : > { %1668 = vmatpush1.bf16.msra.mxu1 %v3183_v61 }
  0x7d   : > { %1344 = vmatmul.mubr.bf16.gmra.mxu0 %v2631_v7  ;;  %v3188_v7 = vld [vmem:[%s4665_s3 + $0x4] ss:$28 sps:$4 sm:$0xff]  }
  0x7e   : > { %1351 = vmatprep.mubr.bf16.mxu0 %v2639_v8  ;;  %3000 = vmatmul.mubr.msk.bf16.gmra.mxu1 %vm1084_vm0, %v2647_v9  ;;  %v3191_v8 = vld [vmem:[%s4665_s3 + $0xc] ss:$28 sps:$4 sm:$0xff]  }
  0x7f   : > { %3003 = vmatprep.mubr.msk.bf16.mxu1 %vm1084_vm0, %v2654_v10  ;;  %1669 = vmatprep.subr.bf16.mxu1 %v3188_v7  ;;  %v3189_v9 = vld [vmem:[%s4665_s3 + $0x8] ss:$28 sps:$4 sm:$0xff]   ;;  %v4668_v10 = vmov 0  }
  0x80   : > { %1670 = vmatpush1.bf16.msra.mxu1 %v3186_v0  ;;  %1782 = vmatprep.subr.bf16.mxu0 %v3191_v8 }
  0x81   : > { %1783 = vmatpush1.bf16.msra.mxu0 %v3189_v9 }
  0x85   : > { %1352 = vmatmul.mubr.bf16.gmra.mxu0 %v2638_v17  ;;  %v3194_v17 = vld [vmem:[%s4665_s3 + $0x4c] ss:$28 sps:$4 sm:$0xff]  }
  0x86   : > { %1359 = vmatprep.mubr.bf16.mxu0 %v2646_v18  ;;  %3004 = vmatmul.mubr.msk.bf16.gmra.mxu1 %vm1084_vm0, %v2661_v19  ;;  %v3759_v18 = vld [vmem:[%s4665_s3 + $0x50] ss:$28 sps:$4 sm:$0xff]  }
  0x87   : > { %3007 = vmatprep.mubr.msk.bf16.mxu1 %vm1084_vm0, %v2668_v20  ;;  %1893 = vmatprep.subr.bf16.mxu1 %v3194_v17 }
  0x88   : > { %3011 = vmatprep.subr.bf16.mxu0 %v3759_v18 }
  0x8d   : > { %1360 = vmatmul.mubr.bf16.gmra.mxu0 %v2645_v26  ;;  %v3765_v26 = vld [vmem:[%s4664_s2] ss:$0 sm:$0xff] }
  0x8e   : > { %1367 = vmatprep.mubr.bf16.mxu0 %v2653_v27  ;;  %3008 = vmatmul.mubr.msk.bf16.gmra.mxu1 %vm1084_vm0, %v2675_v28 }
  0x8f   : > { %1687 = vmatprep.mubr.bf16.mxu1 %v4668_v10 }
  0x95   : > { %1368 = vmatmul.mubr.bf16.gmra.mxu0 %v2652_v35 }
  0x96   : > { %1375 = vmatprep.mubr.bf16.mxu0 %v2660_v36 }
  0x9d   : > { %1376 = vmatmul.mubr.bf16.gmra.mxu0 %v2659_v43 }
  0x9e   : > { %1383 = vmatprep.mubr.bf16.mxu0 %v2667_v44 }
  0xa5   : > { %1384 = vmatmul.mubr.bf16.gmra.mxu0 %v2666_v51 }
  0xa6   : > { %1391 = vmatprep.mubr.bf16.mxu0 %v2674_v52 }
  0xad   : > { %1392 = vmatmul.mubr.bf16.gmra.mxu0 %v2673_v63 }
  0xae   : > { %1800 = vmatprep.mubr.bf16.mxu0 %v4668_v10 }
  0xf5   : > { %v2798_v19 = vpop.f32.mrf.mxu0 }
  0xf6   : > { %v2862_v20 = vpop.f32.mrf.mxu1 }
  0xf7   : > { %v2799_v27 = vpop.f32.mrf.mxu0 }
  0xf8   : > { %v2800_v28 = vadd.f32 %v2799_v27, %v2798_v19  ;;  %v2863_v30 = vpop.f32.mrf.mxu1 }
  0xf9   : > { %v2864_v35 = vadd.f32 %v2863_v30, %v2862_v20  ;;  %v3767_v36 = vpop.f32.mrf.mxu0 }
  0xfa   : > { %v1144_v37 = vadd.f32 %v2800_v28, %v3765_v26  ;;  %v3770_v38 = vpop.f32.mrf.mxu1 }
  0xfb   : > { %v3772_v43 = vpop.f32.mrf.mxu0 }
  0xfc   : > { %v3774_v44 = vadd.f32 %v2864_v35, %v1144_v37  ;;  %v3776_v45 = vpop.f32.mrf.mxu1 }
  0xfd   : > { %v2804_v46 = vpop.f32.mrf.mxu0 }
  0xfe   : > { %v2868_v51 = vpop.f32.mrf.mxu1 }
  0xff   : > { %v2805_v52 = vpop.f32.mrf.mxu0 }
 0x100   : > { %v2806_v53 = vadd.f32 %v2805_v52, %v2804_v46  ;;  %v2869_v54 = vpop.f32.mrf.mxu1 }
 0x101   : > { %v2870_v61 = vadd.f32 %v2869_v54, %v2868_v51  ;;  %v3778_v62 = vpop.f32.mrf.mxu0 }
 0x102   : > { %v1152_v63 = vadd.f32 %v2806_v53, %v3765_v26  ;;  %v3781_v0 = vpop.f32.mrf.mxu1 }
 0x103   : > { %v3783_v7 = vpop.f32.mrf.mxu0 }
 0x104   : > { %v3785_v8 = vadd.f32 %v2870_v61, %v1152_v63  ;;  %v3787_v9 = vpop.f32.mrf.mxu1 }
 0x105   : > { %v2810_v17 = vpop.f32.mrf.mxu0 }
 0x106   : > { %v2874_v19 = vpop.f32.mrf.mxu1 }
 0x107   : > { %v2811_v20 = vpop.f32.mrf.mxu0 }
 0x108   : > { %v2812_v27 = vadd.f32 %v2811_v20, %v2810_v17  ;;  %v2875_v28 = vpop.f32.mrf.mxu1 }
 0x109   : > { %v2876_v30 = vadd.f32 %v2875_v28, %v2874_v19  ;;  %v3789_v35 = vpop.f32.mrf.mxu0 }
 0x10a   : > { %v1160_v37 = vadd.f32 %v2812_v27, %v3765_v26  ;;  %v3792_v46 = vpop.f32.mrf.mxu1 }
 0x10b   : > { %v3794_v51 = vpop.f32.mrf.mxu0 }
 0x10c   : > { %v3796_v52 = vadd.f32 %v2876_v30, %v1160_v37  ;;  %v3798_v53 = vpop.f32.mrf.mxu1 }
 0x10d   : > { %v2816_v54 = vpop.f32.mrf.mxu0 }
 0x10e   : > { %v2880_v61 = vpop.f32.mrf.mxu1 }
 0x10f   : > { %v2817_v63 = vpop.f32.mrf.mxu0 }
 0x110   : > { %v2818_v10 = vadd.f32 %v2817_v63, %v2816_v54  ;;  %v2881_v29 = vpop.f32.mrf.mxu1 }
 0x111   : > { %v2882_v17 = vadd.f32 %v2881_v29, %v2880_v61  ;;  %v3800_v20 = vpop.f32.mrf.mxu0 }
 0x112   : > { %v1168_v19 = vadd.f32 %v2818_v10, %v3765_v26  ;;  %v3803_v28 = vpop.f32.mrf.mxu1 }
 0x113   : > { %v3805_v27 = vpop.f32.mrf.mxu0 }
 0x114   : > { %v3807_v22 = vadd.f32 %v2882_v17, %v1168_v19  ;;  %v3809_v30 = vpop.f32.mrf.mxu1 }
 0x115   : > { %v2822_v37 = vpop.f32.mrf.mxu0 }
 0x116   : > { %v2886_v21 = vpop.f32.mrf.mxu1 }
 0x117   : > { %v2823_v16 = vpop.f32.mrf.mxu0 }
 0x118   : > { %v2824_v24 = vadd.f32 %v2823_v16, %v2822_v37  ;;  %v2887_v12 = vpop.f32.mrf.mxu1 }
 0x119   : > { %v2888_v54 = vadd.f32 %v2887_v12, %v2886_v21  ;;  %v3811_v63 = vpop.f32.mrf.mxu0 }
 0x11a   : > { %v1176_v29 = vadd.f32 %v2824_v24, %v3765_v26  ;;  %v3814_v61 = vpop.f32.mrf.mxu1 }
 0x11b   : > { %v3816_v10 = vpop.f32.mrf.mxu0 }
 0x11c   : > { %v3818_v15 = vadd.f32 %v2888_v54, %v1176_v29  ;;  %v3820_v17 = vpop.f32.mrf.mxu1 }
 0x11d   : > { %v2828_v19 = vpop.f32.mrf.mxu0 }
 0x11e   : > { %v2892_v23 = vpop.f32.mrf.mxu1 }
 0x11f   : > { %v2829_v11 = vpop.f32.mrf.mxu0 }
 0x120   : > { %v2830_v6 = vadd.f32 %v2829_v11, %v2828_v19  ;;  %v2893_v14 = vpop.f32.mrf.mxu1 }
 0x121   : > { %v2894_v16 = vadd.f32 %v2893_v14, %v2892_v23  ;;  %v3822_v37 = vpop.f32.mrf.mxu0 }
 0x122   : > { %v1184_v12 = vadd.f32 %v2830_v6, %v3765_v26  ;;  %v3825_v21 = vpop.f32.mrf.mxu1 }
 0x123   : > { %v3827_v24 = vpop.f32.mrf.mxu0 }
 0x124   : > { %v3829_v2 = vadd.f32 %v2894_v16, %v1184_v12  ;;  %v3831_v54 = vpop.f32.mrf.mxu1 }
 0x125   : > { %v2834_v29 = vpop.f32.mrf.mxu0 }
 0x126   : > { %v2898_v5 = vpop.f32.mrf.mxu1 }
 0x127   : > { %v2835_v13 = vpop.f32.mrf.mxu0 }
 0x128   : > { %v2836_v1 = vadd.f32 %v2835_v13, %v2834_v29  ;;  %v2899_v60 = vpop.f32.mrf.mxu1 }
 0x129   : > { %v2900_v11 = vadd.f32 %v2899_v60, %v2898_v5  ;;  %v3833_v19 = vpop.f32.mrf.mxu0 }
 0x12a   : > { %v1192_v14 = vadd.f32 %v2836_v1, %v3765_v26  ;;  %v3836_v23 = vpop.f32.mrf.mxu1 }
 0x12b   : > { %v3838_v6 = vpop.f32.mrf.mxu0 }
 0x12c   : > { %v3840_v4 = vadd.f32 %v2900_v11, %v1192_v14  ;;  %v3842_v16 = vpop.f32.mrf.mxu1  ;;  %v2803_v11 = vadd.f32 %v3772_v43, %v3767_v36  ;;  %v2809_v36 = vadd.f32 %v3783_v7, %v3778_v62 }
 0x12d   : > { %v2840_v12 = vpop.f32.mrf.mxu0 }
 0x12e   : > { %v2904_v58 = vpop.f32.mrf.mxu1 }
 0x12f   : > { %v2841_v59 = vpop.f32.mrf.mxu0 }
 0x130   : > { %v2842_v3 = vadd.f32 %v2841_v59, %v2840_v12  ;;  %v2905_v57 = vpop.f32.mrf.mxu1 }
 0x131   : > { %v2906_v13 = vadd.f32 %v2905_v57, %v2904_v58  ;;  %v3844_v29 = vpop.f32.mrf.mxu0  ;;  %v1147_v57 = vadd.f32 %v2803_v11, %v3765_v26 }
 0x132   : > { %v1200_v60 = vadd.f32 %v2842_v3, %v3765_v26  ;;  %v3847_v5 = vpop.f32.mrf.mxu1  ;;  %v2867_v3 = vadd.f32 %v3776_v45, %v3770_v38  ;;  %v3192_v38 = vld [vmem:[%s4665_s3 + $0x48] ss:$28 sps:$4 sm:$0xff]   ;;  %v2873_v45 = vadd.f32 %v3787_v9, %v3781_v0  ;;  %v4786_v9 = vmov 0  }
 0x133   : > { %v3849_v1 = vpop.f32.mrf.mxu0 }
 0x134   : > { %v3853_v14 = vadd.f32 %v2906_v13, %v1200_v60  ;;  %v3855_v50 = vpop.f32.mrf.mxu1  ;;  %v1244_v42 = vadd.f32 %v2867_v3, %v1147_v57  ;;  %v2879_v3 = vadd.f32 %v3798_v53, %v3792_v46 }
 0x135   : > { %v2926_v56 = vpop.f32.mrf.mxu0 }
 0x136   : > { %v2997_v48 = vpop.f32.mrf.mxu1 }
 0x137   : > { %v2927_v59 = vpop.f32.mrf.mxu0 }
 0x138   : > { %v2928_v58 = vadd.f32 %v2927_v59, %v2926_v56  ;;  %v1434_v12 = vpop.f32.mrf.mxu1  ;;  %v1155_v56 = vadd.f32 %v2809_v36, %v3765_v26 }
 0x139   : > { %v2929_v49 = vpop.f32.mrf.mxu0 }
 0x13a   : > { %v2998_v55 = vpop.f32.mrf.mxu1  ;;  %v1338_v43 = vadd.f32 %v2928_v58, %v3774_v44 }
 0x13b   : > { %v2930_v47 = vpop.f32.mrf.mxu0 }
 0x13c   : > { %v2931_v13 = vadd.f32 %v2930_v47, %v2929_v49  ;;  %v1437_v41 = vpop.f32.mrf.mxu1  ;;  %v1435_v11 = vadd.f32 %v1434_v12, %v1338_v43 }
 0x13d   : > { %v2932_v60 = vpop.f32.mrf.mxu0 }
 0x13e   : > { %v1341_v40 = vadd.f32 %v2931_v13, %v1244_v42  ;;  %v2815_v42 = vadd.f32 %v3794_v51, %v3789_v35  ;;  %v3873_v49 = vpop.f32.mrf.mxu1  ;;  %v3196_v35 = vld [vmem:[%s4665_s3 + $0x10] ss:$28 sps:$4 sm:$0xff]  }
 0x13f   : > { %v2933_v39 = vpop.f32.mrf.mxu0 }
 0x140   : > { %v1438_v59 = vadd.f32 %v1437_v41, %v1341_v40  ;;  %v2934_v34 = vadd.f32 %v2933_v39, %v2932_v60  ;;  %v3198_v39 = vld [vmem:[%s4665_s3 + $0x14] ss:$28 sps:$4 sm:$0xff]   ;;  %v1252_v41 = vadd.f32 %v2873_v45, %v1155_v56  ;;  %v2821_v56 = vadd.f32 %v3805_v27, %v3800_v20 }
 0x141   : > { %v2935_v32 = vpop.f32.mrf.mxu0  ;;  %v3199_v40 = vld [vmem:[%s4665_s3 + $0x18] ss:$28 sps:$4 sm:$0xff]  }
 0x142   : > { %v3869_v44 = vpack.c.bf16 %v1438_v59, %v1435_v11  ;;  %v1346_v62 = vadd.f32 %v2934_v34, %v3785_v8  ;;  %v1450_v34 = vpop.f32.mrf.mxu1 }
 0x143   : > { %v2936_v47 = vpop.f32.mrf.mxu0 }
 0x144   : > { %v2937_v0 = vadd.f32 %v2936_v47, %v2935_v32  ;;  %2747 = vmatmul.mubr.msk.bf16.vlgmr.msra.gmra.mxu1 %vm1630_vm1, %v3869_v44  ;;  %2755 = vmatmul.mubr.msk.bf16.vlgmr.msra.gmra.mxu0 %vm1630_vm1, %v3869_v44  ;;  %v1163_v32 = vadd.f32 %v2815_v42, %v3765_v26  ;;  %v1443_v57 = vadd.f32 %v2997_v48, %v1346_v62  ;;  %v3002_v60 = vpop.f32.mrf.mxu1 }
 0x145   : > { %v2938_v7 = vpop.f32.mrf.mxu0  ;;  %1894 = vmatpush1.bf16.msra.mxu1 %v3192_v38  ;;  %1697 = vmatprep.mubr.bf16.mxu1 %v4786_v9  ;;  %v1171_v38 = vadd.f32 %v2821_v56, %v3765_v26  ;;  %v2885_v42 = vadd.f32 %v3809_v30, %v3803_v28 }
 0x146   : > { %v1349_v51 = vadd.f32 %v2937_v0, %v1252_v41  ;;  %1810 = vmatprep.mubr.bf16.mxu0 %v4786_v9  ;;  %3012 = vmatpush3.bf16.msra.mxu0 %v3759_v18  ;;  %v1260_v13 = vadd.f32 %v2879_v3, %v1163_v32  ;;  %v1453_v46 = vpop.f32.mrf.mxu1 }
 0x147   : > { %v2939_v8 = vpop.f32.mrf.mxu0  ;;  %1895 = vmatprep.subr.bf16.mxu1 %v3198_v39  ;;  %3013 = vmatprep.subr.bf16.mxu0 %v3199_v40  ;;  %v2827_v39 = vadd.f32 %v3816_v10, %v3811_v63  ;;  %v1268_v62 = vadd.f32 %v2885_v42, %v1171_v38 }
 0x148   : > { %v1446_v58 = vadd.f32 %v2998_v55, %v1349_v51  ;;  %v2940_v12 = vadd.f32 %v2939_v8, %v2938_v7  ;;  %v3005_v41 = vpop.f32.mrf.mxu1 }
 0x149   : > { %v2941_v36 = vpop.f32.mrf.mxu0  ;;  %1896 = vmatpush1.bf16.msra.mxu1 %v3196_v35  ;;  %v1179_v30 = vadd.f32 %v2827_v39, %v3765_v26  ;;  %v2903_v39 = vadd.f32 %v3842_v16, %v3836_v23 }
 0x14a   : > { %v3895_v43 = vpack.c.bf16 %v1446_v58, %v1443_v57  ;;  %3014 = vmatpush3.bf16.msra.mxu0 %v3199_v40  ;;  %v1354_v11 = vadd.f32 %v2940_v12, %v3796_v52  ;;  %v1466_v63 = vpop.f32.mrf.mxu1 }
 0x14b   : > { %v2942_v18 = vpop.f32.mrf.mxu0 }
 0x14c   : > { %v2943_v59 = vadd.f32 %v2942_v18, %v2941_v36  ;;  %2748 = vmatmul.mubr.msk.bf16.gmra.mxu1 %vm1630_vm1, %v3895_v43  ;;  %2756 = vmatmul.mubr.msk.bf16.gmra.mxu0 %vm1630_vm1, %v3895_v43  ;;  %v1451_v20 = vadd.f32 %v1450_v34, %v1354_v11  ;;  %v2891_v34 = vadd.f32 %v3820_v17, %v3814_v61  ;;  %v3006_v12 = vpop.f32.mrf.mxu1 }
 0x14d   : > { %v2944_v48 = vpop.f32.mrf.mxu0  ;;  %1707 = vmatprep.mubr.bf16.mxu1 %v4786_v9  ;;  %1820 = vmatprep.mubr.bf16.mxu0 %v4786_v9  ;;  %v2833_v36 = vadd.f32 %v3827_v24, %v3822_v37 }
 0x14e   : > { %v1357_v55 = vadd.f32 %v2943_v59, %v1260_v13  ;;  %v1276_v58 = vadd.f32 %v2891_v34, %v1179_v30  ;;  %v1469_v17 = vpop.f32.mrf.mxu1  ;;  %v2897_v59 = vadd.f32 %v3831_v54, %v3825_v21 }
 0x14f   : > { %v2945_v53 = vpop.f32.mrf.mxu0  ;;  %v1187_v56 = vadd.f32 %v2833_v36, %v3765_v26 }
 0x150   : > { %v1454_v27 = vadd.f32 %v1453_v46, %v1357_v55  ;;  %v2946_v52 = vadd.f32 %v2945_v53, %v2944_v48  ;;  %v2839_v55 = vadd.f32 %v3838_v6, %v3833_v19  ;;  %v3009_v53 = vpop.f32.mrf.mxu1 }
 0x151   : > { %v2947_v45 = vpop.f32.mrf.mxu0  ;;  %v1284_v38 = vadd.f32 %v2897_v59, %v1187_v56  ;;  %v4038_v59 = vld [vmem:[%s3468_s6 + $0x1c] sm:$0xff] }
 0x152   : > { %v3909_v47 = vpack.c.bf16 %v1454_v27, %v1451_v20  ;;  %v1362_v0 = vadd.f32 %v2946_v52, %v3807_v22  ;;  %v1195_v54 = vadd.f32 %v2839_v55, %v3765_v26  ;;  %v1482_v19 = vpop.f32.mrf.mxu1  ;;  %v4042_v55 = vld [vmem:[%s3468_s6 + $0x24] sm:$0xff] }
 0x153   : > { %v2948_v40 = vpop.f32.mrf.mxu0 }
 0x154   : > { %v2949_v7 = vadd.f32 %v2948_v40, %v2947_v45  ;;  %2749 = vmatmul.mubr.msk.bf16.gmra.mxu1 %vm1630_vm1, %v3909_v47  ;;  %2757 = vmatmul.mubr.msk.bf16.gmra.mxu0 %vm1630_vm1, %v3909_v47  ;;  %v1459_v51 = vadd.f32 %v3873_v49, %v1362_v0  ;;  %v1292_v0 = vadd.f32 %v2903_v39, %v1195_v54 }
 0x155   : > { %v2950_v35 = vpop.f32.mrf.mxu0  ;;  %1717 = vmatprep.mubr.bf16.mxu1 %v4786_v9  ;;  %1830 = vmatprep.mubr.bf16.mxu0 %v4786_v9 }
 0x156   : > { %v1365_v28 = vadd.f32 %v2949_v7, %v1268_v62  ;;  %v3010_v7 = vpop.f32.mrf.mxu1 }
 0x157   : > { %v2951_v10 = vpop.f32.mrf.mxu0 }
 0x158   : > { %v1462_v22 = vadd.f32 %v3002_v60, %v1365_v28  ;;  %v2952_v32 = vadd.f32 %v2951_v10, %v2950_v35  ;;  %v2845_v28 = vadd.f32 %v3849_v1, %v3844_v29  ;;  %v1485_v16 = vpop.f32.mrf.mxu1 }
 0x159   : > { %v2953_v8 = vpop.f32.mrf.mxu0 }
 0x15a   : > { %v3924_v57 = vpack.c.bf16 %v1462_v22, %v1459_v51  ;;  %v1370_v13 = vadd.f32 %v2952_v32, %v3818_v15  ;;  %v1203_v51 = vadd.f32 %v2845_v28, %v3765_v26  ;;  %v4157_v28 = vld [vmem:[%s3468_s6 + $0x16c] sm:$0xff] }
 0x15b   : > { %v2954_v3 = vpop.f32.mrf.mxu0 }
 0x15c   : > { %v2955_v18 = vadd.f32 %v2954_v3, %v2953_v8  ;;  %2750 = vmatmul.mubr.msk.bf16.gmra.mxu1 %vm1630_vm1, %v3924_v57  ;;  %2758 = vmatmul.mubr.msk.bf16.gmra.mxu0 %vm1630_vm1, %v3924_v57  ;;  %v1467_v37 = vadd.f32 %v1466_v63, %v1370_v13 }
 0x15d   : > { %v2956_v49 = vpop.f32.mrf.mxu0  ;;  %1727 = vmatprep.mubr.bf16.mxu1 %v4786_v9  ;;  %1840 = vmatprep.mubr.bf16.mxu0 %v4786_v9 }
 0x15e   : > { %v1373_v61 = vadd.f32 %v2955_v18, %v1276_v58 }
 0x15f   : > { %v2957_v60 = vpop.f32.mrf.mxu0 }
 0x160   : > { %v1470_v24 = vadd.f32 %v1469_v17, %v1373_v61  ;;  %v2958_v15 = vadd.f32 %v2957_v60, %v2956_v49  ;;  %v4023_v17 = vld [vmem:[%s3468_s6 + $0x8] sm:$0xff] }
 0x161   : > { %v2959_v11 = vpop.f32.mrf.mxu0 }
 0x162   : > { %v3938_v48 = vpack.c.bf16 %v1470_v24, %v1467_v37  ;;  %v1378_v20 = vadd.f32 %v2958_v15, %v3829_v2 }
 0x163   : > { %v2960_v46 = vpop.f32.mrf.mxu0 }
 0x164   : > { %v2961_v27 = vadd.f32 %v2960_v46, %v2959_v11  ;;  %2751 = vmatmul.mubr.msk.bf16.gmra.mxu1 %vm1630_vm1, %v3938_v48  ;;  %2759 = vmatmul.mubr.msk.bf16.gmra.mxu0 %vm1630_vm1, %v3938_v48  ;;  %v1475_v45 = vadd.f32 %v3005_v41, %v1378_v20  ;;  %v4048_v20 = vld [vmem:[%s3468_s6 + $0x38] sm:$0xff] }
 0x165   : > { %v2962_v52 = vpop.f32.mrf.mxu0  ;;  %1737 = vmatprep.mubr.bf16.mxu1 %v4786_v9  ;;  %1850 = vmatprep.mubr.bf16.mxu0 %v4786_v9 }
 0x166   : > { %v1381_v21 = vadd.f32 %v2961_v27, %v1284_v38 }
 0x167   : > { %v2963_v6 = vpop.f32.mrf.mxu0 }
 0x168   : > { %v1478_v42 = vadd.f32 %v3006_v12, %v1381_v21  ;;  %v2964_v2 = vadd.f32 %v2963_v6, %v2962_v52  ;;  %v4052_v52 = vld [vmem:[%s3468_s6 + $0x40] sm:$0xff]  ;;  %v4058_v6 = vld [vmem:[%s3468_s6 + $0x54] sm:$0xff] }
 0x169   : > { %v2965_v40 = vpop.f32.mrf.mxu0 }
 0x16a   : > { %v1502_v62 = vpack.c.bf16 %v1478_v42, %v1475_v45  ;;  %v1386_v30 = vadd.f32 %v2964_v2, %v3840_v4  ;;  %v2909_v4 = vadd.f32 %v3855_v50, %v3847_v5  ;;  %v4736_v50 = vlaneseq  ;;  %v4062_v42 = vld [vmem:[%s3468_s6 + $0x5c] sm:$0xff] }
 0x16b   : > { %v2966_v35 = vpop.f32.mrf.mxu0  ;;  %v3294_v2 = vmov 1966171168  }
 0x16c   : > { %v2967_v63 = vadd.f32 %v2966_v35, %v2965_v40  ;;  %2752 = vmatmul.mubr.msk.bf16.gmra.mxu1 %vm1630_vm1, %v1502_v62  ;;  %2760 = vmatmul.mubr.msk.bf16.gmra.mxu0 %vm1630_vm1, %v1502_v62  ;;  %v1483_v22 = vadd.f32 %v1482_v19, %v1386_v30  ;;  %v1300_v58 = vadd.f32 %v2909_v4, %v1203_v51  ;;  %v4004_v5 = vshrl.u32 %v4736_v50, 7  ;;  %v4118_v50 = vld [vmem:[%s3468_s6 + $0xfc] sm:$0xff]  ;;  %v4790_v35 = vld [vmem:[#allocation9_spill] sm:$0xff]  ;;  %v4791_v40 = vld [vmem:[#allocation8_spill] sm:$0xff] }
 0x16d   : > { %v2968_v41 = vpop.f32.mrf.mxu0  ;;  %1747 = vmatprep.mubr.bf16.mxu1 %v4786_v9  ;;  %1860 = vmatprep.mubr.bf16.mxu0 %v4786_v9  ;;  %v4134_v4 = vld [vmem:[%s3468_s6 + $0x120] sm:$0xff]  ;;  %v2489_v45 = vunpack.c.l.s4 %v3294_v2  ;;  %v4792_v19 = vld [vmem:[#allocation10_spill] sm:$0xff] }
 0x16e   : > { %v1389_v23 = vadd.f32 %v2967_v63, %v1292_v0  ;;  %v4078_v63 = vld [vmem:[%s3468_s6 + $0x8c] sm:$0xff] }
 0x16f   : > { %v2969_v10 = vpop.f32.mrf.mxu0  ;;  %v2490_v15 = vunpack.c.0.s8 %v2489_v45 }
 0x170   : > { %v1486_v32 = vadd.f32 %v1485_v16, %v1389_v23  ;;  %v2970_v29 = vadd.f32 %v2969_v10, %v2968_v41  ;;  %v4082_v23 = vld [vmem:[%s3468_s6 + $0x94] sm:$0xff]  ;;  %v1541_v10 = vsub.s32 4, %v4004_v5 }
 0x171   : > { %v2971_v1 = vpop.f32.mrf.mxu0  ;;  %v4788_v41 = vld [vmem:[#allocation6_spill] sm:$0xff]  ;;  %v4206_v21 = vsub.s32 %v2490_v15, %v4004_v5 }
 0x172   : > { %v1503_v34 = vpack.c.bf16 %v1486_v32, %v1483_v22  ;;  %v1394_v12 = vadd.f32 %v2970_v29, %v3853_v14  ;;  %v1525_v14 = vsub.s32 0, %v4004_v5  ;;  %v4088_v22 = vld [vmem:[%s3468_s6 + $0xa8] sm:$0xff]  ;;  %v4092_v29 = vld [vmem:[%s3468_s6 + $0xb0] sm:$0xff]  ;;  %v4789_v32 = vld [vmem:[#allocation7_spill] sm:$0xff] }
 0x173   : > { %v2972_v8 = vpop.f32.mrf.mxu0  ;;  %4813 = vst [vmem:[#allocation9_spill] sm:$0xff] %v4206_v21 }
 0x174   : > { %v2973_v3 = vadd.f32 %v2972_v8, %v2971_v1  ;;  %2753 = vmatmul.mubr.msk.bf16.gmra.mxu1 %vm1630_vm1, %v1503_v34  ;;  %2761 = vmatmul.mubr.msk.bf16.gmra.mxu0 %vm1630_vm1, %v1503_v34  ;;  %v1491_v36 = vadd.f32 %v3009_v53, %v1394_v12  ;;  %v4098_v8 = vld [vmem:[%s3468_s6 + $0xc4] sm:$0xff]  ;;  %v4102_v12 = vld [vmem:[%s3468_s6 + $0xcc] sm:$0xff]  ;;  %v4138_v1 = vld [vmem:[%s3468_s6 + $0x134] sm:$0xff] }
 0x175   : > { %1757 = vmatprep.mubr.bf16.mxu1 %v4786_v9  ;;  %1870 = vmatprep.mubr.bf16.mxu0 %v4786_v9 }
 0x176   : > { %v1397_v26 = vadd.f32 %v2973_v3, %v1300_v58  ;;  %v4787_v3 = vld [vmem:[#allocation5_spill] sm:$0xff]  ;;  %v1549_v58 = vsub.s32 6, %v4004_v5 }
 0x178   : > { %v1494_v13 = vadd.f32 %v3010_v7, %v1397_v26  ;;  %v4072_v7 = vld [vmem:[%s3468_s6 + $0x78] sm:$0xff] }
 0x17a   : > { %v1504_v18 = vpack.c.bf16 %v1494_v13, %v1491_v36  ;;  %v4108_v13 = vld [vmem:[%s3468_s6 + $0xe0] sm:$0xff] }
 0x17b   : > { %v4122_v36 = vld [vmem:[%s3468_s6 + $0x104] sm:$0xff] }
 0x17c   : > { %2754 = vmatmul.mubr.msk.bf16.gmra.mxu1 %vm1630_vm1, %v1504_v18  ;;  %2762 = vmatmul.mubr.msk.bf16.gmra.mxu0 %vm1630_vm1, %v1504_v18 }
 0x17d   : > { %3015 = vmatprep.mubr.msk.bf16.mxu0 %vm1630_vm1, %v3869_v44  ;;  %1913 = vmatprep.mubr.bf16.mxu1 %v4786_v9 }
 0x184   : > { %2763 = vmatmul.mubr.msk.bf16.vlgmr.msra.gmra.mxu1 %vm1630_vm1, %v3869_v44  ;;  %3016 = vmatmul.mubr.msk.bf16.vlgmr.msra.gmra.mxu0 %vm1630_vm1, %v3895_v43  ;;  %v4010_v44 = vld [vmem:[%s4666_s4] sm:$0x7f] }
 0x185   : > { %3019 = vmatprep.mubr.msk.bf16.mxu0 %vm1630_vm1, %v3909_v47  ;;  %1923 = vmatprep.mubr.bf16.mxu1 %v4786_v9  ;;  %v4020_v61 = vrot.slane %v4010_v44, %v1525_v14  ;;  %v4112_v14 = vld [vmem:[%s3468_s6 + $0xe8] sm:$0xff]  ;;  %v4173_v26 = vrot.slane %v4010_v44, %v1541_v10  ;;  %v4178_v16 = vrot.slane %v4010_v44, %v1549_v58 }
 0x186   : > { %v4826_v58 = vld [vmem:[#allocation37_spill] sm:$0xff] }
 0x187   : > { %4793 = vst [vmem:[#allocation5_spill] sm:$0xff] %v4173_v26  ;;  %4796 = vst [vmem:[#allocation6_spill] sm:$0xff] %v4178_v16 }
 0x18c   : > { %2764 = vmatmul.mubr.msk.bf16.gmra.mxu1 %vm1630_vm1, %v3895_v43  ;;  %3020 = vmatmul.mubr.msk.bf16.gmra.mxu0 %vm1630_vm1, %v3924_v57  ;;  %v1533_v43 = vsub.s32 2, %v4004_v5 }
 0x18d   : > { %3023 = vmatprep.mubr.msk.bf16.mxu0 %vm1630_vm1, %v3938_v48  ;;  %1933 = vmatprep.mubr.bf16.mxu1 %v4786_v9 }
 0x18e   : > { %v4027_v56 = vrot.slane %v4010_v44, %v1533_v43  ;;  %v1545_v43 = vsub.s32 5, %v4004_v5 }
 0x190   : > { %v4181_v39 = vrot.slane %v4010_v44, %v1545_v43 }
 0x192   : > { %4797 = vst [vmem:[#allocation7_spill] sm:$0xff] %v4181_v39 }
 0x194   : > { %2765 = vmatmul.mubr.msk.bf16.gmra.mxu1 %vm1630_vm1, %v3909_v47  ;;  %3024 = vmatmul.mubr.msk.bf16.gmra.mxu0 %vm1630_vm1, %v1502_v62  ;;  %v1529_v47 = vsub.s32 1, %v4004_v5 }
 0x195   : > { %3027 = vmatprep.mubr.msk.bf16.mxu0 %vm1630_vm1, %v1503_v34  ;;  %1943 = vmatprep.mubr.bf16.mxu1 %v4786_v9 }
 0x196   : > { %v4030_v37 = vrot.slane %v4010_v44, %v1529_v47  ;;  %v4161_v47 = vld [vmem:[%s3468_s6 + $0x174] sm:$0xff] }
 0x19c   : > { %2766 = vmatmul.mubr.msk.bf16.gmra.mxu1 %vm1630_vm1, %v3924_v57  ;;  %3028 = vmatmul.mubr.msk.bf16.gmra.mxu0 %vm1630_vm1, %v1504_v18  ;;  %v4016_v57 = vld [vmem:[%s3468_s6] sm:$0xff] }
 0x19d   : > { %1953 = vmatprep.mubr.bf16.mxu1 %v4786_v9  ;;  %v4825_v45 = vunpack.c.h.bf16 %v4016_v57 }
 0x1a4   : > { %2767 = vmatmul.mubr.msk.bf16.gmra.mxu1 %vm1630_vm1, %v3938_v48  ;;  %v4824_v48 = vunpack.c.l.bf16 %v4023_v17 }
 0x1a5   : > { %1963 = vmatprep.mubr.bf16.mxu1 %v4786_v9 }
 0x1ac   : > { %2768 = vmatmul.mubr.msk.bf16.gmra.mxu1 %vm1630_vm1, %v1502_v62  ;;  %v4068_v62 = vld [vmem:[%s3468_s6 + $0x70] sm:$0xff] }
 0x1ad   : > { %1973 = vmatprep.mubr.bf16.mxu1 %v4786_v9 }
 0x1b4   : > { %2769 = vmatmul.mubr.msk.bf16.gmra.mxu1 %vm1630_vm1, %v1503_v34  ;;  %v4128_v34 = vld [vmem:[%s3468_s6 + $0x118] sm:$0xff] }
 0x1b5   : > { %1983 = vmatprep.mubr.bf16.mxu1 %v4786_v9  ;;  %v1537_v9 = vsub.s32 3, %v4004_v5  ;;  %v4819_v5 = vunpack.c.l.bf16 %v4016_v57  ;;  %v4829_v57 = vunpack.c.h.bf16 %v4038_v59 }
 0x1b7   : > { %v4033_v24 = vrot.slane %v4010_v44, %v1537_v9 }
 0x1bc   : > { %2770 = vmatmul.mubr.msk.bf16.gmra.mxu1 %vm1630_vm1, %v1504_v18  ;;  %v4142_v18 = vld [vmem:[%s3468_s6 + $0x13c] sm:$0xff] }
 0x204   : > { %v1689_v27 = vpop.f32.mrf.mxu1  ;;  %v1802_v46 = vpop.f32.mrf.mxu0 }
 0x205   : > { %v1690_v39 = vadd.f32 %v1689_v27, %v4020_v61  ;;  %v1803_v9 = vadd.f32 %v1802_v46, %v4027_v56 }
 0x206   : > { %v1691_v53 = vpop.f32.mrf.mxu1  ;;  %v1804_v30 = vpop.f32.mrf.mxu0 }
 0x207   : > { %v1692_v49 = vadd.f32 %v1691_v53, %v4030_v37  ;;  %v2091_v15 = vsub.f32 %v4819_v5, %v1690_v39  ;;  %v2093_v0 = vsub.f32 %v4824_v48, %v1803_v9  ;;  %v1805_v39 = vadd.f32 %v1804_v30, %v4033_v24 }
 0x208   : > { %v1693_v46 = vpop.f32.mrf.mxu1  ;;  %v1806_v21 = vpop.f32.mrf.mxu0  ;;  %v4827_v48 = vunpack.c.l.bf16 %v4038_v59  ;;  %v4828_v30 = vunpack.c.l.bf16 %v4042_v55  ;;  %v4832_v59 = vunpack.c.l.bf16 %v4048_v20 }
 0x209   : > { %v1694_v5 = vadd.f32 %v1693_v46, %v4020_v61  ;;  %v1807_v51 = vadd.f32 %v1806_v21, %v4027_v56  ;;  %v2092_v44 = vsub.f32 %v4825_v45, %v1692_v49  ;;  %v2203_v27 = vmul.f32 %v2091_v15, %v2091_v15 }
 0x20a   : > { %v1695_v11 = vpop.f32.mrf.mxu1  ;;  %v1808_v2 = vpop.f32.mrf.mxu0  ;;  %v2205_v43 = vmul.f32 %v2093_v0, %v2093_v0 }
 0x20b   : > { %v1696_v53 = vadd.f32 %v1695_v11, %v4030_v37  ;;  %v1809_v60 = vadd.f32 %v1808_v2, %v4033_v24  ;;  %v2098_v9 = vsub.f32 %v4827_v48, %v1694_v5  ;;  %v2100_v46 = vsub.f32 %v4828_v30, %v1807_v51 }
 0x20c   : > { %v1699_v10 = vpop.f32.mrf.mxu1  ;;  %v1812_v21 = vpop.f32.mrf.mxu0  ;;  %v4830_v11 = vunpack.c.h.bf16 %v4042_v55  ;;  %v4831_v5 = vunpack.c.h.bf16 %v4023_v17  ;;  %v2204_v26 = vmul.f32 %v2092_v44, %v2092_v44  ;;  %v4833_v55 = vunpack.c.l.bf16 %v4052_v52 }
 0x20d   : > { %v2099_v49 = vsub.f32 %v4829_v57, %v1696_v53  ;;  %v1700_v2 = vadd.f32 %v1699_v10, %v4020_v61  ;;  %v1813_v15 = vadd.f32 %v1812_v21, %v4027_v56  ;;  %v2210_v54 = vmul.f32 %v2098_v9, %v2098_v9 }
 0x20e   : > { %v2101_v45 = vsub.f32 %v4830_v11, %v1809_v60  ;;  %v2094_v48 = vsub.f32 %v4831_v5, %v1805_v39  ;;  %v2212_v51 = vmul.f32 %v2100_v46, %v2100_v46  ;;  %v1701_v30 = vpop.f32.mrf.mxu1  ;;  %v1814_v16 = vpop.f32.mrf.mxu0  ;;  %v4834_v44 = vunpack.c.h.bf16 %v4048_v20 }
 0x20f   : > { %v2211_v38 = vmul.f32 %v2099_v49, %v2099_v49  ;;  %v2105_v53 = vsub.f32 %v4832_v59, %v1700_v2  ;;  %v2107_v60 = vsub.f32 %v4833_v55, %v1813_v15  ;;  %v2315_v57 = vadd.f32 %v2210_v54, %v2203_v27 }
 0x210   : > { %v2357_v10 = vadd.f32 %v2212_v51, %v2205_v43  ;;  %v1702_v21 = vadd.f32 %v1701_v30, %v4030_v37  ;;  %v1815_v0 = vadd.f32 %v1814_v16, %v4033_v24  ;;  %v1703_v17 = vpop.f32.mrf.mxu1  ;;  %v1816_v39 = vpop.f32.mrf.mxu0  ;;  %v2213_v46 = vmul.f32 %v2101_v45, %v2101_v45 }
 0x211   : > { %v2336_v9 = vadd.f32 %v2211_v38, %v2204_v26  ;;  %v2217_v11 = vmul.f32 %v2105_v53, %v2105_v53  ;;  %v2219_v5 = vmul.f32 %v2107_v60, %v2107_v60  ;;  %v4835_v2 = vunpack.c.h.bf16 %v4052_v52 }
 0x212   : > { %v2106_v49 = vsub.f32 %v4834_v44, %v1702_v21  ;;  %v1704_v15 = vadd.f32 %v1703_v17, %v4020_v61  ;;  %v1817_v54 = vadd.f32 %v1816_v39, %v4027_v56  ;;  %v1705_v43 = vpop.f32.mrf.mxu1  ;;  %v1818_v27 = vpop.f32.mrf.mxu0  ;;  %v2206_v51 = vmul.f32 %v2094_v48, %v2094_v48 }
 0x213   : > { %v2108_v59 = vsub.f32 %v4835_v2, %v1815_v0  ;;  %v2316_v16 = vadd.f32 %v2315_v57, %v2217_v11  ;;  %v1706_v30 = vadd.f32 %v1705_v43, %v4030_v37  ;;  %v1819_v38 = vadd.f32 %v1818_v27, %v4033_v24 }
 0x214   : > { %v2218_v26 = vmul.f32 %v2106_v49, %v2106_v49  ;;  %v4836_v20 = vunpack.c.l.bf16 %v4058_v6  ;;  %v4837_v52 = vunpack.c.l.bf16 %v4062_v42  ;;  %v1709_v60 = vpop.f32.mrf.mxu1  ;;  %v1822_v21 = vpop.f32.mrf.mxu0  ;;  %v4838_v0 = vunpack.c.h.bf16 %v4058_v6 }
 0x215   : > { %v2220_v45 = vmul.f32 %v2108_v59, %v2108_v59  ;;  %v4839_v48 = vunpack.c.h.bf16 %v4062_v42  ;;  %v1710_v39 = vadd.f32 %v1709_v60, %v4020_v61  ;;  %v1823_v11 = vadd.f32 %v1822_v21, %v4027_v56 }
 0x216   : > { %v2112_v53 = vsub.f32 %v4836_v20, %v1704_v15  ;;  %v2114_v55 = vsub.f32 %v4837_v52, %v1817_v54  ;;  %v2113_v17 = vsub.f32 %v4838_v0, %v1706_v30  ;;  %v2378_v44 = vadd.f32 %v2213_v46, %v2206_v51  ;;  %v1711_v15 = vpop.f32.mrf.mxu1  ;;  %v1824_v43 = vpop.f32.mrf.mxu0 }
 0x217   : > { %v2115_v57 = vsub.f32 %v4839_v48, %v1819_v38  ;;  %v2358_v49 = vadd.f32 %v2357_v10, %v2219_v5  ;;  %v2337_v2 = vadd.f32 %v2336_v9, %v2218_v26  ;;  %v4840_v20 = vunpack.c.l.bf16 %v4068_v62 }
 0x218   : > { %v2224_v59 = vmul.f32 %v2112_v53, %v2112_v53  ;;  %v2226_v27 = vmul.f32 %v2114_v55, %v2114_v55  ;;  %v2225_v54 = vmul.f32 %v2113_v17, %v2113_v17  ;;  %v4841_v6 = vunpack.c.l.bf16 %v4072_v7  ;;  %v1713_v46 = vpop.f32.mrf.mxu1  ;;  %v1826_v10 = vpop.f32.mrf.mxu0 }
 0x219   : > { %v2119_v52 = vsub.f32 %v4840_v20, %v1710_v39  ;;  %v2379_v42 = vadd.f32 %v2378_v44, %v2220_v45  ;;  %v1712_v60 = vadd.f32 %v1711_v15, %v4030_v37  ;;  %v1825_v21 = vadd.f32 %v1824_v43, %v4033_v24 }
 0x21a   : > { %v2121_v30 = vsub.f32 %v4841_v6, %v1823_v11  ;;  %v2317_v38 = vadd.f32 %v2316_v16, %v2224_v59  ;;  %v2338_v9 = vadd.f32 %v2337_v2, %v2225_v54  ;;  %v2227_v5 = vmul.f32 %v2115_v57, %v2115_v57  ;;  %v1715_v45 = vpop.f32.mrf.mxu1  ;;  %v1828_v39 = vpop.f32.mrf.mxu0 }
 0x21b   : > { %v2231_v51 = vmul.f32 %v2119_v52, %v2119_v52  ;;  %v4842_v53 = vunpack.c.h.bf16 %v4068_v62  ;;  %v4843_v0 = vunpack.c.h.bf16 %v4072_v7  ;;  %v1714_v48 = vadd.f32 %v1713_v46, %v4020_v61 }
 0x21c   : > { %v2233_v26 = vmul.f32 %v2121_v30, %v2121_v30  ;;  %v1827_v16 = vadd.f32 %v1826_v10, %v4027_v56  ;;  %v2359_v11 = vadd.f32 %v2358_v49, %v2226_v27  ;;  %v1716_v59 = vadd.f32 %v1715_v45, %v4030_v37  ;;  %v1719_v20 = vpop.f32.mrf.mxu1  ;;  %v1832_v52 = vpop.f32.mrf.mxu0 }
 0x21d   : > { %v2120_v55 = vsub.f32 %v4842_v53, %v1712_v60  ;;  %v2122_v17 = vsub.f32 %v4843_v0, %v1825_v21  ;;  %v2318_v44 = vadd.f32 %v2317_v38, %v2231_v51  ;;  %v1829_v57 = vadd.f32 %v1828_v39, %v4033_v24 }
 0x21e   : > { %v4844_v62 = vunpack.c.l.bf16 %v4078_v63  ;;  %v4845_v7 = vunpack.c.l.bf16 %v4082_v23  ;;  %v4846_v6 = vunpack.c.h.bf16 %v4078_v63  ;;  %v4847_v49 = vunpack.c.h.bf16 %v4082_v23  ;;  %v1721_v53 = vpop.f32.mrf.mxu1 }
 0x21f   : > { %v2232_v2 = vmul.f32 %v2120_v55, %v2120_v55  ;;  %v2234_v15 = vmul.f32 %v2122_v17, %v2122_v17  ;;  %v1720_v38 = vadd.f32 %v1719_v20, %v4020_v61  ;;  %v1833_v60 = vadd.f32 %v1832_v52, %v4027_v56  ;;  %v1834_v55 = vpop.f32.mrf.mxu0 }
 0x220   : > { %v2126_v43 = vsub.f32 %v4844_v62, %v1714_v48  ;;  %v2128_v54 = vsub.f32 %v4845_v7, %v1827_v16  ;;  %v2127_v30 = vsub.f32 %v4846_v6, %v1716_v59  ;;  %v2129_v27 = vsub.f32 %v4847_v49, %v1829_v57 }
 0x221   : > { %v2380_v21 = vadd.f32 %v2379_v42, %v2227_v5  ;;  %v2360_v46 = vadd.f32 %v2359_v11, %v2233_v26  ;;  %v2339_v10 = vadd.f32 %v2338_v9, %v2232_v2  ;;  %v4848_v48 = vunpack.c.l.bf16 %v4088_v22  ;;  %v1723_v42 = vpop.f32.mrf.mxu1  ;;  %v1836_v5 = vpop.f32.mrf.mxu0 }
 0x222   : > { %v2238_v51 = vmul.f32 %v2126_v43, %v2126_v43  ;;  %v2240_v0 = vmul.f32 %v2128_v54, %v2128_v54  ;;  %v2239_v17 = vmul.f32 %v2127_v30, %v2127_v30  ;;  %v4849_v63 = vunpack.c.l.bf16 %v4092_v29 }
 0x223   : > { %v2133_v16 = vsub.f32 %v4848_v48, %v1720_v38  ;;  %v2381_v23 = vadd.f32 %v2380_v21, %v2234_v15  ;;  %v1722_v59 = vadd.f32 %v1721_v53, %v4030_v37  ;;  %v1835_v57 = vadd.f32 %v1834_v55, %v4033_v24  ;;  %v1725_v15 = vpop.f32.mrf.mxu1  ;;  %v1838_v52 = vpop.f32.mrf.mxu0 }
 0x224   : > { %v2135_v45 = vsub.f32 %v4849_v63, %v1833_v60  ;;  %v2319_v39 = vadd.f32 %v2318_v44, %v2238_v51  ;;  %v2340_v9 = vadd.f32 %v2339_v10, %v2239_v17  ;;  %v2241_v26 = vmul.f32 %v2129_v27, %v2129_v27 }
 0x225   : > { %v2245_v11 = vmul.f32 %v2133_v16, %v2133_v16  ;;  %v4850_v62 = vunpack.c.h.bf16 %v4088_v22  ;;  %v4851_v7 = vunpack.c.h.bf16 %v4092_v29  ;;  %v1724_v20 = vadd.f32 %v1723_v42, %v4020_v61  ;;  %v1729_v51 = vpop.f32.mrf.mxu1  ;;  %v1842_v53 = vpop.f32.mrf.mxu0 }
 0x226   : > { %v2247_v2 = vmul.f32 %v2135_v45, %v2135_v45  ;;  %v1837_v44 = vadd.f32 %v1836_v5, %v4027_v56  ;;  %v2361_v6 = vadd.f32 %v2360_v46, %v2240_v0  ;;  %v1726_v49 = vadd.f32 %v1725_v15, %v4030_v37 }
 0x227   : > { %v2134_v43 = vsub.f32 %v4850_v62, %v1722_v59  ;;  %v2136_v54 = vsub.f32 %v4851_v7, %v1835_v57  ;;  %v2320_v30 = vadd.f32 %v2319_v39, %v2245_v11  ;;  %v1839_v27 = vadd.f32 %v1838_v52, %v4033_v24  ;;  %v1731_v57 = vpop.f32.mrf.mxu1  ;;  %v1844_v42 = vpop.f32.mrf.mxu0 }
 0x228   : > { %v4852_v22 = vunpack.c.l.bf16 %v4098_v8  ;;  %v4853_v29 = vunpack.c.l.bf16 %v4102_v12  ;;  %v4854_v55 = vunpack.c.h.bf16 %v4098_v8  ;;  %v4855_v46 = vunpack.c.h.bf16 %v4102_v12 }
 0x229   : > { %v2246_v38 = vmul.f32 %v2134_v43, %v2134_v43  ;;  %v2248_v60 = vmul.f32 %v2136_v54, %v2136_v54  ;;  %v1730_v48 = vadd.f32 %v1729_v51, %v4020_v61  ;;  %v1843_v16 = vadd.f32 %v1842_v53, %v4027_v56 }
 0x22a   : > { %v2140_v21 = vsub.f32 %v4852_v22, %v1724_v20  ;;  %v2142_v10 = vsub.f32 %v4853_v29, %v1837_v44  ;;  %v2141_v17 = vsub.f32 %v4854_v55, %v1726_v49  ;;  %v2143_v0 = vsub.f32 %v4855_v46, %v1839_v27 }
 0x22b   : > { %v2382_v63 = vadd.f32 %v2381_v23, %v2241_v26  ;;  %v2362_v45 = vadd.f32 %v2361_v6, %v2247_v2  ;;  %v2341_v39 = vadd.f32 %v2340_v9, %v2246_v38  ;;  %v4856_v62 = vunpack.c.l.bf16 %v4108_v13  ;;  %v1733_v23 = vpop.f32.mrf.mxu1  ;;  %v1846_v26 = vpop.f32.mrf.mxu0 }
 0x22c   : > { %v2252_v59 = vmul.f32 %v2140_v21, %v2140_v21  ;;  %v2254_v5 = vmul.f32 %v2142_v10, %v2142_v10  ;;  %v2253_v11 = vmul.f32 %v2141_v17, %v2141_v17  ;;  %v4857_v8 = vunpack.c.l.bf16 %v4112_v14 }
 0x22d   : > { %v2147_v43 = vsub.f32 %v4856_v62, %v1730_v48  ;;  %v2383_v12 = vadd.f32 %v2382_v63, %v2248_v60  ;;  %v1732_v20 = vadd.f32 %v1731_v57, %v4030_v37  ;;  %v1845_v44 = vadd.f32 %v1844_v42, %v4033_v24  ;;  %v1735_v60 = vpop.f32.mrf.mxu1  ;;  %v1848_v21 = vpop.f32.mrf.mxu0 }
 0x22e   : > { %v2149_v7 = vsub.f32 %v4857_v8, %v1843_v16  ;;  %v2321_v54 = vadd.f32 %v2320_v30, %v2252_v59  ;;  %v2342_v9 = vadd.f32 %v2341_v39, %v2253_v11  ;;  %v2255_v2 = vmul.f32 %v2143_v0, %v2143_v0 }
 0x22f   : > { %v2259_v15 = vmul.f32 %v2147_v43, %v2147_v43  ;;  %v4858_v6 = vunpack.c.h.bf16 %v4108_v13  ;;  %v4859_v27 = vunpack.c.h.bf16 %v4112_v14  ;;  %v1734_v22 = vadd.f32 %v1733_v23, %v4020_v61  ;;  %v1739_v48 = vpop.f32.mrf.mxu1  ;;  %v1852_v16 = vpop.f32.mrf.mxu0 }
 0x230   : > { %v2261_v52 = vmul.f32 %v2149_v7, %v2149_v7  ;;  %v1847_v30 = vadd.f32 %v1846_v26, %v4027_v56  ;;  %v2363_v29 = vadd.f32 %v2362_v45, %v2254_v5  ;;  %v1736_v51 = vadd.f32 %v1735_v60, %v4030_v37 }
 0x231   : > { %v2148_v49 = vsub.f32 %v4858_v6, %v1732_v20  ;;  %v2150_v38 = vsub.f32 %v4859_v27, %v1845_v44  ;;  %v2322_v10 = vadd.f32 %v2321_v54, %v2259_v15  ;;  %v1849_v53 = vadd.f32 %v1848_v21, %v4033_v24  ;;  %v1741_v8 = vpop.f32.mrf.mxu1  ;;  %v1854_v7 = vpop.f32.mrf.mxu0 }
 0x232   : > { %v4860_v13 = vunpack.c.l.bf16 %v4118_v50  ;;  %v4861_v14 = vunpack.c.l.bf16 %v4122_v36  ;;  %v4862_v63 = vunpack.c.h.bf16 %v4118_v50  ;;  %v4863_v45 = vunpack.c.h.bf16 %v4122_v36 }
 0x233   : > { %v2260_v55 = vmul.f32 %v2148_v49, %v2148_v49  ;;  %v2262_v17 = vmul.f32 %v2150_v38, %v2150_v38  ;;  %v1740_v57 = vadd.f32 %v1739_v48, %v4020_v61  ;;  %v1853_v42 = vadd.f32 %v1852_v16, %v4027_v56 }
 0x234   : > { %v2154_v46 = vsub.f32 %v4860_v13, %v1734_v22  ;;  %v2156_v0 = vsub.f32 %v4861_v14, %v1847_v30  ;;  %v2155_v39 = vsub.f32 %v4862_v63, %v1736_v51  ;;  %v2157_v59 = vsub.f32 %v4863_v45, %v1849_v53 }
 0x235   : > { %v2384_v5 = vadd.f32 %v2383_v12, %v2255_v2  ;;  %v2364_v11 = vadd.f32 %v2363_v29, %v2261_v52  ;;  %v2343_v62 = vadd.f32 %v2342_v9, %v2260_v55  ;;  %v4864_v44 = vunpack.c.l.bf16 %v4128_v34  ;;  %v1743_v12 = vpop.f32.mrf.mxu1  ;;  %v1856_v2 = vpop.f32.mrf.mxu0 }
 0x236   : > { %v2266_v43 = vmul.f32 %v2154_v46, %v2154_v46  ;;  %v2268_v54 = vmul.f32 %v2156_v0, %v2156_v0  ;;  %v2267_v20 = vmul.f32 %v2155_v39, %v2155_v39  ;;  %v4865_v50 = vunpack.c.l.bf16 %v3550_v25 }
 0x237   : > { %v2161_v23 = vsub.f32 %v4864_v44, %v1740_v57  ;;  %v2385_v36 = vadd.f32 %v2384_v5, %v2262_v17  ;;  %v1742_v6 = vadd.f32 %v1741_v8, %v4030_v37  ;;  %v1855_v49 = vadd.f32 %v1854_v7, %v4033_v24  ;;  %v1858_v51 = vpop.f32.mrf.mxu0 }
 0x238   : > { %v2163_v26 = vsub.f32 %v4865_v50, %v1853_v42  ;;  %v2323_v15 = vadd.f32 %v2322_v10, %v2266_v43  ;;  %v2344_v9 = vadd.f32 %v2343_v62, %v2267_v20  ;;  %v2269_v52 = vmul.f32 %v2157_v59, %v2157_v59  ;;  %v1745_v10 = vpop.f32.mrf.mxu1 }
 0x239   : > { %v2273_v27 = vmul.f32 %v2161_v23, %v2161_v23  ;;  %v4866_v22 = vunpack.c.h.bf16 %v4128_v34  ;;  %v4867_v60 = vunpack.c.h.bf16 %v4134_v4  ;;  %v1744_v25 = vadd.f32 %v1743_v12, %v4020_v61  ;;  %v1862_v63 = vpop.f32.mrf.mxu0 }
 0x23a   : > { %v2275_v38 = vmul.f32 %v2163_v26, %v2163_v26  ;;  %v1857_v29 = vadd.f32 %v1856_v2, %v4027_v56  ;;  %v2365_v53 = vadd.f32 %v2364_v11, %v2268_v54  ;;  %v1746_v17 = vadd.f32 %v1745_v10, %v4030_v37  ;;  %v1749_v16 = vpop.f32.mrf.mxu1 }
 0x23b   : > { %v2162_v30 = vsub.f32 %v4866_v22, %v1742_v6  ;;  %v2164_v21 = vsub.f32 %v4867_v60, %v1855_v49  ;;  %v2324_v55 = vadd.f32 %v2323_v15, %v2273_v27  ;;  %v1859_v13 = vadd.f32 %v1858_v51, %v4033_v24  ;;  %v1864_v54 = vpop.f32.mrf.mxu0 }
 0x23c   : > { %v4868_v34 = vunpack.c.l.bf16 %v4138_v1  ;;  %v4869_v4 = vunpack.c.l.bf16 %v4142_v18  ;;  %v4870_v39 = vunpack.c.h.bf16 %v4138_v1  ;;  %v4871_v59 = vunpack.c.h.bf16 %v4142_v18  ;;  %v1751_v7 = vpop.f32.mrf.mxu1 }
 0x23d   : > { %v2274_v46 = vmul.f32 %v2162_v30, %v2162_v30  ;;  %v2276_v14 = vmul.f32 %v2164_v21, %v2164_v21  ;;  %v1750_v42 = vadd.f32 %v1749_v16, %v4020_v61  ;;  %v1863_v5 = vadd.f32 %v1862_v63, %v4027_v56  ;;  %v1866_v12 = vpop.f32.mrf.mxu0 }
 0x23e   : > { %v2168_v0 = vsub.f32 %v4868_v34, %v1744_v25  ;;  %v2170_v48 = vsub.f32 %v4869_v4, %v1857_v29  ;;  %v2169_v45 = vsub.f32 %v4870_v39, %v1746_v17  ;;  %v2171_v57 = vsub.f32 %v4871_v59, %v1859_v13 }
 0x23f   : > { %v2386_v11 = vadd.f32 %v2385_v36, %v2269_v52  ;;  %v2366_v62 = vadd.f32 %v2365_v53, %v2275_v38  ;;  %v2345_v43 = vadd.f32 %v2344_v9, %v2274_v46  ;;  %v4872_v23 = vunpack.c.l.bf16 %v3555_v31  ;;  %v1753_v36 = vpop.f32.mrf.mxu1  ;;  %v1868_v10 = vpop.f32.mrf.mxu0 }
 0x240   : > { %v2280_v8 = vmul.f32 %v2168_v0, %v2168_v0  ;;  %v2282_v20 = vmul.f32 %v2170_v48, %v2170_v48  ;;  %v2281_v44 = vmul.f32 %v2169_v45, %v2169_v45  ;;  %v4873_v1 = vunpack.c.l.bf16 %v3561_v33 }
 0x241   : > { %v2175_v50 = vsub.f32 %v4872_v23, %v1750_v42  ;;  %v2387_v18 = vadd.f32 %v2386_v11, %v2276_v14  ;;  %v1752_v6 = vadd.f32 %v1751_v7, %v4030_v37  ;;  %v1865_v49 = vadd.f32 %v1864_v54, %v4033_v24  ;;  %v1755_v29 = vpop.f32.mrf.mxu1  ;;  %v1872_v4 = vpop.f32.mrf.mxu0 }
 0x242   : > { %v2177_v26 = vsub.f32 %v4873_v1, %v1863_v5  ;;  %v2325_v15 = vadd.f32 %v2324_v55, %v2280_v8  ;;  %v2346_v2 = vadd.f32 %v2345_v43, %v2281_v44  ;;  %v2283_v9 = vmul.f32 %v2171_v57, %v2171_v57 }
 0x243   : > { %v2287_v52 = vmul.f32 %v2175_v50, %v2175_v50  ;;  %v4874_v38 = vunpack.c.h.bf16 %v3555_v31  ;;  %v4875_v30 = vunpack.c.h.bf16 %v3561_v33  ;;  %v1754_v21 = vadd.f32 %v1753_v36, %v4020_v61  ;;  %v1759_v0 = vpop.f32.mrf.mxu1 }
 0x244   : > { %v2289_v27 = vmul.f32 %v2177_v26, %v2177_v26  ;;  %v1867_v25 = vadd.f32 %v1866_v12, %v4027_v56  ;;  %v2367_v51 = vadd.f32 %v2366_v62, %v2282_v20  ;;  %v1756_v55 = vadd.f32 %v1755_v29, %v4030_v37  ;;  %v1874_v62 = vpop.f32.mrf.mxu0 }
 0x245   : > { %v2176_v22 = vsub.f32 %v4874_v38, %v1752_v6  ;;  %v2178_v60 = vsub.f32 %v4875_v30, %v1865_v49  ;;  %v2326_v53 = vadd.f32 %v2325_v15, %v2287_v52  ;;  %v1869_v17 = vadd.f32 %v1868_v10, %v4033_v24  ;;  %v1761_v11 = vpop.f32.mrf.mxu1 }
 0x246   : > { %v4876_v31 = vunpack.c.l.bf16 %v4787_v3  ;;  %v4877_v33 = vunpack.c.l.bf16 %v4788_v41  ;;  %v4878_v48 = vunpack.c.h.bf16 %v4157_v28  ;;  %v4879_v63 = vunpack.c.h.bf16 %v4161_v47  ;;  %v1876_v1 = vpop.f32.mrf.mxu0 }
 0x247   : > { %v2288_v13 = vmul.f32 %v2176_v22, %v2176_v22  ;;  %v2290_v46 = vmul.f32 %v2178_v60, %v2178_v60  ;;  %v1760_v45 = vadd.f32 %v1759_v0, %v4020_v61  ;;  %v1873_v59 = vadd.f32 %v1872_v4, %v4027_v56  ;;  %v1763_v50 = vpop.f32.mrf.mxu1 }
 0x248   : > { %v2182_v14 = vsub.f32 %v4876_v31, %v1754_v21  ;;  %v2184_v34 = vsub.f32 %v4877_v33, %v1867_v25  ;;  %v2183_v16 = vsub.f32 %v4878_v48, %v1756_v55  ;;  %v2185_v39 = vsub.f32 %v4879_v63, %v1869_v17  ;;  %v1878_v38 = vpop.f32.mrf.mxu0 }
 0x249   : > { %v2388_v57 = vadd.f32 %v2387_v18, %v2283_v9  ;;  %v2368_v42 = vadd.f32 %v2367_v51, %v2289_v27  ;;  %v2347_v5 = vadd.f32 %v2346_v2, %v2288_v13  ;;  %v4880_v8 = vunpack.c.l.bf16 %v4789_v32  ;;  %v1765_v27 = vpop.f32.mrf.mxu1 }
 0x24a   : > { %v2294_v3 = vmul.f32 %v2182_v14, %v2182_v14  ;;  %v2296_v41 = vmul.f32 %v2184_v34, %v2184_v34  ;;  %v2295_v43 = vmul.f32 %v2183_v16, %v2183_v16  ;;  %v4881_v28 = vunpack.c.l.bf16 %v4790_v35 }
 0x24b   : > { %v2189_v7 = vsub.f32 %v4880_v8, %v1760_v45  ;;  %v2389_v47 = vadd.f32 %v2388_v57, %v2290_v46  ;;  %v1762_v44 = vadd.f32 %v1761_v11, %v4030_v37  ;;  %v1875_v23 = vadd.f32 %v1874_v62, %v4033_v24  ;;  %v4888_v45 = vld [vmem:[#allocation5_spill] sm:$0xff]  ;;  %v4889_v57 = vld [vmem:[#allocation6_spill] sm:$0xff] }
 0x24c   : > { %v2191_v54 = vsub.f32 %v4881_v28, %v1873_v59  ;;  %v2327_v20 = vadd.f32 %v2326_v53, %v2294_v3  ;;  %v2348_v26 = vadd.f32 %v2347_v5, %v2295_v43  ;;  %v2297_v18 = vmul.f32 %v2185_v39, %v2185_v39  ;;  %v3017_v53 = vpop.f32.mrf.mxu0  ;;  %v4423_v43 = vld [vmem:[%s3468_s6 + $0x160] sm:$0xff] }
 0x24d   : > { %v2301_v15 = vmul.f32 %v2189_v7, %v2189_v7  ;;  %v4882_v49 = vunpack.c.h.bf16 %v4789_v32  ;;  %v4883_v12 = vunpack.c.h.bf16 %v4790_v35  ;;  %v1764_v9 = vadd.f32 %v1763_v50, %v4020_v61  ;;  %v1915_v61 = vpop.f32.mrf.mxu1 }
 0x24e   : > { %v2303_v6 = vmul.f32 %v2191_v54, %v2191_v54  ;;  %v1877_v52 = vadd.f32 %v1876_v1, %v4027_v56  ;;  %v2369_v22 = vadd.f32 %v2368_v42, %v2296_v41  ;;  %v1766_v60 = vadd.f32 %v1765_v27, %v4030_v37  ;;  %v4415_v37 = vld [vmem:[%s3468_s6 + $0x144] sm:$0xff]  ;;  %v2028_v4 = vpop.f32.mrf.mxu0 }
 0x24f   : > { %v2190_v36 = vsub.f32 %v4882_v49, %v1762_v44  ;;  %v2192_v2 = vsub.f32 %v4883_v12, %v1875_v23  ;;  %v2328_v30 = vadd.f32 %v2327_v20, %v2301_v15  ;;  %v1879_v21 = vadd.f32 %v1878_v38, %v4033_v24  ;;  %v1917_v0 = vpop.f32.mrf.mxu1  ;;  %v4428_v44 = vld [vmem:[%s3468_s6 + $0x17c] sm:$0xff] }
 0x250   : > { %v4884_v32 = vunpack.c.l.bf16 %v4791_v40  ;;  %v4885_v35 = vunpack.c.l.bf16 %v4792_v19  ;;  %v2390_v56 = vadd.f32 %v2389_v47, %v2297_v18  ;;  %v4886_v55 = vunpack.c.h.bf16 %v4791_v40  ;;  %v3018_v3 = vpop.f32.mrf.mxu0  ;;  %v4892_v12 = vld [vmem:[#allocation11_spill] sm:$0xff] }
 0x251   : > { %v2302_v25 = vmul.f32 %v2190_v36, %v2190_v36  ;;  %v2304_v29 = vmul.f32 %v2192_v2, %v2192_v2  ;;  %v4887_v13 = vunpack.c.h.bf16 %v4792_v19  ;;  %v374_v24 = vunpack.c.l.bf16 %v4415_v37  ;;  %v1919_v5 = vpop.f32.mrf.mxu1  ;;  %v4437_v38 = vld [vmem:[%s3468_s6 + $0x198] sm:$0xff] }
 0x252   : > { %v2196_v10 = vsub.f32 %v4884_v32, %v1764_v9  ;;  %v2198_v51 = vsub.f32 %v4885_v35, %v1877_v52  ;;  %v2197_v17 = vsub.f32 %v4886_v55, %v1766_v60  ;;  %v2370_v31 = vadd.f32 %v2369_v22, %v2303_v6  ;;  %v2031_v47 = vpop.f32.mrf.mxu0 }
 0x253   : > { %v2199_v46 = vsub.f32 %v4887_v13, %v1879_v21  ;;  %v2349_v14 = vadd.f32 %v2348_v26, %v2302_v25  ;;  %v2391_v48 = vadd.f32 %v2390_v56, %v2304_v29  ;;  %v375_v40 = vunpack.c.h.bf16 %v4415_v37  ;;  %v1921_v54 = vpop.f32.mrf.mxu1  ;;  %v4890_v26 = vld [vmem:[#allocation13_spill] sm:$0xff]  ;;  %v4894_v21 = vld [vmem:[#allocation15_spill] sm:$0xff] }
 0x254   : > { %v2308_v33 = vmul.f32 %v2196_v10, %v2196_v10  ;;  %v2310_v34 = vmul.f32 %v2198_v51, %v2198_v51  ;;  %v2309_v16 = vmul.f32 %v2197_v17, %v2197_v17  ;;  %v1916_v59 = vadd.f32 %v1915_v61, %v4888_v45  ;;  %v3021_v27 = vpop.f32.mrf.mxu0  ;;  %v4896_v51 = vld [vmem:[#allocation7_spill] sm:$0xff] }
 0x255   : > { %v2311_v63 = vmul.f32 %v2199_v46, %v2199_v46  ;;  %v2029_v42 = vadd.f32 %v2028_v4, %v4889_v57  ;;  %v2037_v41 = vadd.f32 %v3017_v53, %v4889_v57  ;;  %v381_v8 = vunpack.c.l.bf16 %v4423_v43  ;;  %v1925_v52 = vpop.f32.mrf.mxu1 }
 0x256   : > { %v2329_v39 = vadd.f32 %v2328_v30, %v2308_v33  ;;  %v2371_v19 = vadd.f32 %v2370_v31, %v2310_v34  ;;  %v2350_v11 = vadd.f32 %v2349_v14, %v2309_v16  ;;  %v382_v20 = vunpack.c.h.bf16 %v4423_v43  ;;  %v2044_v55 = vpop.f32.mrf.mxu0  ;;  %v4897_v34 = vld [vmem:[#allocation16_spill] sm:$0xff] }
 0x257   : > { %v2392_v62 = vadd.f32 %v2391_v48, %v2311_v63  ;;  %v388_v23 = vunpack.c.l.bf16 %v4428_v44  ;;  %v4891_v18 = vunpack.c.l.bf16 %v4890_v26  ;;  %v389_v6 = vunpack.c.h.bf16 %v4428_v44  ;;  %v1927_v56 = vpop.f32.mrf.mxu1 }
 0x258   : > { %v2330_v7 = vrot.slane %v2329_v39, 4  ;;  %v2372_v28 = vrot.slane %v2371_v19, 4  ;;  %v2351_v50 = vrot.slane %v2350_v11, 4  ;;  %v4893_v2 = vunpack.c.l.bf16 %v4892_v12 }
 0x259   : > { %v2393_v1 = vrot.slane %v2392_v62, 4  ;;  %v2097_v15 = vsub.f32 %v4891_v18, %v2029_v42  ;;  %v395_v22 = vunpack.c.l.bf16 %v4437_v38  ;;  %v4895_v25 = vunpack.c.l.bf16 %v4894_v21  ;;  %v1929_v63 = vpop.f32.mrf.mxu1  ;;  %v4902_v18 = vld [vmem:[#allocation12_spill] sm:$0xff] }
 0x25a   : > { %v2331_v49 = vadd.f32 %v2330_v7, %v2329_v39  ;;  %v2373_v36 = vadd.f32 %v2372_v28, %v2371_v19  ;;  %v2095_v9 = vsub.f32 %v4893_v2, %v1916_v59  ;;  %v2352_v30 = vadd.f32 %v2351_v50, %v2350_v11  ;;  %v3022_v39 = vpop.f32.mrf.mxu0 }
 0x25b   : > { %v2394_v60 = vadd.f32 %v2393_v1, %v2392_v62  ;;  %v2111_v29 = vsub.f32 %v4895_v25, %v2037_v41  ;;  %v2040_v32 = vadd.f32 %v3018_v3, %v4889_v57  ;;  %v1918_v61 = vadd.f32 %v1917_v0, %v4896_v51  ;;  %v4900_v41 = vld [vmem:[#allocation14_spill] sm:$0xff] }
 0x25c   : > { %v2332_v10 = vrot.slane %v2331_v49, 2  ;;  %v2374_v35 = vrot.slane %v2373_v36, 2  ;;  %v1920_v53 = vadd.f32 %v1919_v5, %v4888_v45  ;;  %v2353_v17 = vrot.slane %v2352_v30, 2  ;;  %v2047_v50 = vpop.f32.mrf.mxu0 }
 0x25d   : > { %v2395_v13 = vrot.slane %v2394_v60, 2  ;;  %v2209_v46 = vmul.f32 %v2097_v15, %v2097_v15  ;;  %v1922_v31 = vadd.f32 %v1921_v54, %v4896_v51  ;;  %v4898_v4 = vunpack.c.l.bf16 %v4897_v34  ;;  %v1931_v54 = vpop.f32.mrf.mxu1 }
 0x25e   : > { %v2333_v14 = vadd.f32 %v2332_v10, %v2331_v49  ;;  %v2375_v33 = vadd.f32 %v2374_v35, %v2373_v36  ;;  %v2032_v16 = vadd.f32 %v2031_v47, %v4889_v57  ;;  %v2354_v19 = vadd.f32 %v2353_v17, %v2352_v30  ;;  %v3025_v21 = vpop.f32.mrf.mxu0 }
 0x25f   : > { %v2118_v48 = vsub.f32 %v4898_v4, %v2040_v32  ;;  %v2396_v0 = vadd.f32 %v2395_v13, %v2394_v60  ;;  %v2207_v59 = vmul.f32 %v2095_v9, %v2095_v9  ;;  %v2223_v42 = vmul.f32 %v2111_v29, %v2111_v29  ;;  %v1935_v60 = vpop.f32.mrf.mxu1 }
 0x260   : > { %v2334_v5 = vrot.slane %v2333_v14, 1  ;;  %v2376_v3 = vrot.slane %v2375_v33, 1  ;;  %v4899_v11 = vunpack.c.h.bf16 %v4892_v12  ;;  %v4901_v7 = vunpack.c.l.bf16 %v4900_v41 }
 0x261   : > { %v2355_v1 = vrot.slane %v2354_v19, 1  ;;  %v2397_v26 = vrot.slane %v2396_v0, 1  ;;  %v4903_v47 = vunpack.c.l.bf16 %v4902_v18  ;;  %v1926_v49 = vadd.f32 %v1925_v52, %v4888_v45  ;;  %v4905_v52 = vld [vmem:[#allocation17_spill] sm:$0xff] }
 0x262   : > { %v2096_v62 = vsub.f32 %v4899_v11, %v1918_v61  ;;  %v2104_v28 = vsub.f32 %v4901_v7, %v2032_v16  ;;  %v2441_v36 = vsel %vm1084_vm0, %v2209_v46, 0.0  ;;  %v2230_v2 = vmul.f32 %v2118_v48, %v2118_v48  ;;  %v1937_v46 = vpop.f32.mrf.mxu1 }
 0x263   : > { %v2102_v15 = vsub.f32 %v4903_v47, %v1920_v53  ;;  %v4904_v9 = vunpack.c.h.bf16 %v4902_v18  ;;  %v4459_v25 = vadd.f32 %v2334_v5, %v2333_v14  ;;  %v4461_v29 = vadd.f32 %v2376_v3, %v2375_v33  ;;  %v4909_v47 = vld [vmem:[#allocation23_spill] sm:$0xff] }
 0x264   : > { %v2216_v12 = vmul.f32 %v2104_v28, %v2104_v28  ;;  %v4463_v32 = vadd.f32 %v2355_v1, %v2354_v19  ;;  %v4465_v10 = vadd.f32 %v2397_v26, %v2396_v0  ;;  %v4906_v61 = vunpack.c.l.bf16 %v4905_v52  ;;  %v4907_v19 = vld [vmem:[#allocation19_spill] sm:$0xff] }
 0x265   : > { %v2103_v30 = vsub.f32 %v4904_v9, %v1922_v31  ;;  %v2053_v17 = vadd.f32 %v3021_v27, %v4889_v57  ;;  %v2045_v13 = vadd.f32 %v2044_v55, %v4889_v57  ;;  %v2060_v31 = vpop.f32.mrf.mxu0  ;;  %v1928_v4 = vadd.f32 %v1927_v56, %v4896_v51  ;;  %v1939_v55 = vpop.f32.mrf.mxu1 }
 0x266   : > { %v2442_v35 = vsel %vm1084_vm0, %v2216_v12, 0.0  ;;  %v2109_v53 = vsub.f32 %v4906_v61, %v1926_v49  ;;  %v2485_v14 = vcombine.low %v4459_v25, %v4463_v32  ;;  %v2486_v33 = vcombine.low %v4461_v29, %v4465_v10 }
 0x267   : > { %v2443_v34 = vadd.f32 %v2442_v35, %v2441_v36  ;;  %v2444_v48 = vsel %vm1084_vm0, %v2223_v42, 0.0  ;;  %v2214_v16 = vmul.f32 %v2102_v15, %v2102_v15  ;;  %v4908_v0 = vunpack.c.l.bf16 %v4907_v19  ;;  %v3026_v3 = vpop.f32.mrf.mxu0  ;;  %v1941_v42 = vpop.f32.mrf.mxu1 }
 0x268   : > { %v1930_v27 = vadd.f32 %v1929_v63, %v4888_v45  ;;  %v2215_v11 = vmul.f32 %v2103_v30, %v2103_v30  ;;  %v2056_v7 = vadd.f32 %v3022_v39, %v4889_v57  ;;  %v1932_v28 = vadd.f32 %v1931_v54, %v4896_v51  ;;  %v4912_v54 = vld [vmem:[#allocation18_spill] sm:$0xff] }
 0x269   : > { %v2125_v5 = vsub.f32 %v4908_v0, %v2045_v13  ;;  %v2445_v41 = vadd.f32 %v2444_v48, %v2443_v34  ;;  %v2208_v1 = vmul.f32 %v2096_v62, %v2096_v62  ;;  %v2446_v26 = vsel %vm1084_vm0, %v2230_v2, 0.0  ;;  %v2063_v12 = vpop.f32.mrf.mxu0  ;;  %v4914_v2 = vld [vmem:[#allocation24_spill] sm:$0xff]  ;;  %v1945_v34 = vpop.f32.mrf.mxu1 }
 0x26a   : > { %v2221_v56 = vmul.f32 %v2109_v53, %v2109_v53  ;;  %v4910_v15 = vunpack.c.l.bf16 %v4909_v47  ;;  %v4911_v36 = vunpack.c.h.bf16 %v4905_v52  ;;  %v2048_v30 = vadd.f32 %v2047_v50, %v4889_v57 }
 0x26b   : > { %v2237_v18 = vmul.f32 %v2125_v5, %v2125_v5  ;;  %v2447_v9 = vadd.f32 %v2446_v26, %v2445_v41  ;;  %v2399_v35 = vadd.f32 %v2214_v16, %v2207_v59  ;;  %v4913_v62 = vunpack.c.l.bf16 %v4912_v54  ;;  %v1947_v41 = vpop.f32.mrf.mxu1 }
 0x26c   : > { %v2139_v49 = vsub.f32 %v4910_v15, %v2053_v17  ;;  %v2110_v63 = vsub.f32 %v4911_v36, %v1928_v4  ;;  %v4915_v53 = vunpack.c.l.bf16 %v4914_v2  ;;  %v2420_v48 = vadd.f32 %v2215_v11, %v2208_v1  ;;  %v4917_v4 = vld [vmem:[#allocation20_spill] sm:$0xff]  ;;  %v3029_v1 = vpop.f32.mrf.mxu0 }
 0x26d   : > { %v2448_v39 = vsel %vm1084_vm0, %v2237_v18, 0.0  ;;  %v2116_v61 = vsub.f32 %v4913_v62, %v1930_v27  ;;  %v4916_v17 = vunpack.c.h.bf16 %v4912_v54  ;;  %v4918_v0 = vunpack.c.l.bf16 %v4917_v4  ;;  %v4923_v54 = vld [vmem:[#allocation29_spill] sm:$0xff] }
 0x26e   : > { %v2146_v13 = vsub.f32 %v4915_v53, %v2056_v7  ;;  %v2449_v19 = vadd.f32 %v2448_v39, %v2447_v9  ;;  %v1936_v50 = vadd.f32 %v1935_v60, %v4888_v45  ;;  %v2069_v59 = vadd.f32 %v3025_v21, %v4889_v57  ;;  %v1949_v60 = vpop.f32.mrf.mxu1  ;;  %v2076_v4 = vpop.f32.mrf.mxu0 }
 0x26f   : > { %v2117_v52 = vsub.f32 %v4916_v17, %v1932_v28  ;;  %v2132_v5 = vsub.f32 %v4918_v0, %v2048_v30  ;;  %v1938_v16 = vadd.f32 %v1937_v46, %v4896_v51  ;;  %v2061_v27 = vadd.f32 %v2060_v31, %v4889_v57  ;;  %v4919_v28 = vld [vmem:[#allocation25_spill] sm:$0xff] }
 0x270   : > { %v2400_v26 = vadd.f32 %v2399_v35, %v2221_v56  ;;  %v2251_v7 = vmul.f32 %v2139_v49, %v2139_v49  ;;  %v2222_v18 = vmul.f32 %v2110_v63, %v2110_v63  ;;  %v2228_v47 = vmul.f32 %v2116_v61, %v2116_v61  ;;  %v4921_v49 = vld [vmem:[#allocation21_spill] sm:$0xff] }
 0x271   : > { %v2244_v11 = vmul.f32 %v2132_v5, %v2132_v5  ;;  %v2258_v15 = vmul.f32 %v2146_v13, %v2146_v13  ;;  %v4920_v36 = vunpack.c.l.bf16 %v4919_v28  ;;  %v1940_v30 = vadd.f32 %v1939_v55, %v4888_v45  ;;  %v1951_v13 = vpop.f32.mrf.mxu1 }
 0x272   : > { %v2229_v39 = vmul.f32 %v2117_v52, %v2117_v52  ;;  %v2072_v46 = vadd.f32 %v3026_v3, %v4889_v57  ;;  %v1942_v31 = vadd.f32 %v1941_v42, %v4896_v51  ;;  %v4922_v63 = vunpack.c.l.bf16 %v4921_v49 }
 0x273   : > { %v2153_v9 = vsub.f32 %v4920_v36, %v2061_v27  ;;  %v2450_v21 = vsel %vm1084_vm0, %v2244_v11, 0.0  ;;  %v4924_v62 = vunpack.c.l.bf16 %v4923_v54  ;;  %v4925_v2 = vunpack.c.h.bf16 %v4921_v49 }
 0x274   : > { %v2451_v56 = vadd.f32 %v2450_v21, %v2449_v19  ;;  %v2123_v35 = vsub.f32 %v4922_v63, %v1936_v50  ;;  %v2452_v55 = vsel %vm1084_vm0, %v2251_v7, 0.0  ;;  %v2421_v17 = vadd.f32 %v2420_v48, %v2222_v18  ;;  %v4926_v19 = vld [vmem:[#allocation22_spill] sm:$0xff] }
 0x275   : > { %v2167_v61 = vsub.f32 %v4924_v62, %v2069_v59  ;;  %v2124_v53 = vsub.f32 %v4925_v2, %v1938_v16  ;;  %v2265_v52 = vmul.f32 %v2153_v9, %v2153_v9  ;;  %v396_v3 = vunpack.c.h.bf16 %v4437_v38  ;;  %v4928_v50 = vld [vmem:[#allocation30_spill] sm:$0xff]  ;;  %v1955_v59 = vpop.f32.mrf.mxu1 }
 0x276   : > { %v2401_v0 = vadd.f32 %v2400_v26, %v2228_v47  ;;  %v2453_v42 = vadd.f32 %v2452_v55, %v2451_v56  ;;  %v4927_v5 = vunpack.c.l.bf16 %v4926_v19  ;;  %v4929_v11 = vunpack.c.l.bf16 %v4928_v50  ;;  %v4931_v56 = vld [vmem:[#allocation26_spill] sm:$0xff] }
 0x277   : > { %v2454_v36 = vsel %vm1084_vm0, %v2258_v15, 0.0  ;;  %v2422_v16 = vadd.f32 %v2421_v17, %v2229_v39  ;;  %v4930_v21 = vunpack.c.h.bf16 %v4926_v19  ;;  %v2064_v48 = vadd.f32 %v2063_v12, %v4889_v57  ;;  %v1957_v47 = vpop.f32.mrf.mxu1  ;;  %v3030_v39 = vpop.f32.mrf.mxu0  ;;  %v4532_v17 = vld [vmem:[%s3468_s6 + $0x1b4] sm:$0xff]  ;;  %s218_s6 = sand.u32 1, %s3283_s19  }
 0x278   : > { %v2130_v27 = vsub.f32 %v4927_v5, %v1940_v30  ;;  %v2174_v28 = vsub.f32 %v4929_v11, %v2072_v46  ;;  %v2235_v18 = vmul.f32 %v2123_v35, %v2123_v35  ;;  %v2279_v9 = vmul.f32 %v2167_v61, %v2167_v61  ;;  %s3031_s17 = smul.u32 7, %s218_s6  ;;  %s2540_s9 = scalar_lea.sflag [#allocation3], %s218_s6 }
 0x279   : > { %v2131_v7 = vsub.f32 %v4930_v21, %v1942_v31  ;;  %v2236_v49 = vmul.f32 %v2124_v53, %v2124_v53  ;;  %v2455_v26 = vadd.f32 %v2454_v36, %v2453_v42  ;;  %v2456_v30 = vsel %vm1084_vm0, %v2265_v52, 0.0  ;;  %v1959_v35 = vpop.f32.mrf.mxu1  ;;  %v4937_v21 = vld [vmem:[#allocation35_spill] sm:$0xff] }
 0x27a   : > { %v4932_v63 = vunpack.c.l.bf16 %v4931_v56  ;;  %v1946_v54 = vadd.f32 %v1945_v34, %v4888_v45  ;;  %v2085_v15 = vadd.f32 %v3029_v1, %v4889_v57  ;;  %v2242_v31 = vmul.f32 %v2130_v27, %v2130_v27  ;;  %v4933_v34 = vld [vmem:[#allocation31_spill] sm:$0xff]  ;;  %s220_s26 = scalar_lea.vmem [#allocation2], %s3031_s17 }
 0x27b   : > { %v2457_v62 = vadd.f32 %v2456_v30, %v2455_v26  ;;  %v2286_v2 = vmul.f32 %v2174_v28, %v2174_v28  ;;  %v2077_v12 = vadd.f32 %v2076_v4, %v4889_v57  ;;  %v2243_v61 = vmul.f32 %v2131_v7, %v2131_v7  ;;  %v1961_v27 = vpop.f32.mrf.mxu1  ;;  %v4935_v4 = vld [vmem:[#allocation27_spill] sm:$0xff]  ;;  %v2079_v26 = vpop.f32.mrf.mxu0  ;;  %s2554_s25 = sshll.u32 %s220_s26, 4  ;;  %s2555_s25 = int_to_ptr.vmem [resolvable:$true] %s2554_s25 }
 0x27c   : > { %v2160_v46 = vsub.f32 %v4932_v63, %v2064_v48  ;;  %v1948_v55 = vadd.f32 %v1947_v41, %v4896_v51  ;;  %v402_v52 = vunpack.c.l.bf16 %v4532_v17  ;;  %v2402_v42 = vadd.f32 %v2401_v0, %v2235_v18  ;;  %s3231_s10 = scalar_lea.vmem %s2555_s25, 112  ;;  %p3238_p0 = scmp.lt.s32.totalorder %s2555_s25, %s3236_s11 }
 0x27d   : > { %v2423_v19 = vadd.f32 %v2422_v16, %v2236_v49  ;;  %v4934_v5 = vunpack.c.l.bf16 %v4933_v34  ;;  %v1950_v50 = vadd.f32 %v1949_v60, %v4888_v45  ;;  %v4936_v28 = vunpack.c.l.bf16 %v4935_v4  ;;  %v1965_v30 = vpop.f32.mrf.mxu1  ;;  %p3232_p11 = scmp.ne.s32.totalorder %s2555_s25, %s3231_s10  ;;  %p3239_p1 = scmp.lt.s32.totalorder %s3237_s12, %s3231_s10 }
 0x27e   : > { %v2272_v53 = vmul.f32 %v2160_v46, %v2160_v46  ;;  %v4938_v7 = vunpack.c.l.bf16 %v4937_v21  ;;  %v1952_v48 = vadd.f32 %v1951_v13, %v4896_v51  ;;  %v2460_v0 = vsel %vm1084_vm0, %v2279_v9, 0.0 }
 0x27f   : > { %v2181_v1 = vsub.f32 %v4934_v5, %v2077_v12  ;;  %v2137_v36 = vsub.f32 %v4936_v28, %v1946_v54  ;;  %v2403_v16 = vadd.f32 %v2402_v42, %v2242_v31  ;;  %v2462_v18 = vsel %vm1084_vm0, %v2286_v2, 0.0  ;;  %v1967_v31 = vpop.f32.mrf.mxu1  ;;  %v4943_v5 = vld [vmem:[#allocation32_spill] sm:$0xff]  ;;  %p3233_p12 = pnand %p3232_p11, %p3364_p5  ;;  %p3240_p2 = por %p3239_p1, %p3238_p0 }
 0x280   : > { %v2458_v11 = vsel %vm1084_vm0, %v2272_v53, 0.0  ;;  %v2195_v41 = vsub.f32 %v4938_v7, %v2085_v15  ;;  %v2424_v60 = vadd.f32 %v2423_v19, %v2243_v61  ;;  %v4939_v56 = vunpack.c.h.bf16 %v4935_v4  ;;  %v4940_v53 = vld [vmem:[#allocation28_spill] sm:$0xff] }
 0x281   : > { %v2459_v49 = vadd.f32 %v2458_v11, %v2457_v62  ;;  %v2293_v46 = vmul.f32 %v2181_v1, %v2181_v1  ;;  %v2088_v54 = vadd.f32 %v3030_v39, %v4889_v57  ;;  %v4941_v15 = vunpack.c.l.bf16 %v4940_v53  ;;  %v4945_v11 = vld [vmem:[#allocation33_spill] sm:$0xff]  ;;  %p3234_p13 = pneg %p3233_p12 }
 0x282   : > { %v2138_v63 = vsub.f32 %v4939_v56, %v1948_v55  ;;  %v2080_v13 = vadd.f32 %v2079_v26, %v4889_v57  ;;  %v1956_v9 = vadd.f32 %v1955_v59, %v4888_v45  ;;  %v2249_v42 = vmul.f32 %v2137_v36, %v2137_v36  ;;  %v1969_v57 = vpop.f32.mrf.mxu1 }
 0x283   : > { %v2461_v12 = vadd.f32 %v2460_v0, %v2459_v49  ;;  %v2144_v34 = vsub.f32 %v4941_v15, %v1950_v50  ;;  %v2307_v2 = vmul.f32 %v2195_v41, %v2195_v41  ;;  %v4942_v62 = vunpack.c.h.bf16 %v4940_v53  ;;  %v4950_v15 = vld [vmem:[#allocation34_spill] sm:$0xff]  ;;  %p3241_p3 = pnand %p3240_p2, %p3234_p13 }
 0x284   : > { %v1958_v19 = vadd.f32 %v1957_v47, %v4896_v51  ;;  %v4944_v1 = vunpack.c.l.bf16 %v4943_v5  ;;  %v4946_v4 = vunpack.c.l.bf16 %v4945_v11  ;;  %v1960_v50 = vadd.f32 %v1959_v35, %v4888_v45  ;;  %v4947_v47 = vld [vmem:[#allocation36_spill] sm:$0xff]  ;;  %v1971_v49 = vpop.f32.mrf.mxu1 }
 0x285   : > { %v2145_v61 = vsub.f32 %v4942_v62, %v1952_v48  ;;  %v2463_v55 = vadd.f32 %v2462_v18, %v2461_v12  ;;  %v2250_v21 = vmul.f32 %v2138_v63, %v2138_v63  ;;  %v2464_v59 = vsel %vm1084_vm0, %v2293_v46, 0.0 }
 0x286   : > { %v2188_v39 = vsub.f32 %v4944_v1, %v2080_v13  ;;  %v2151_v28 = vsub.f32 %v4946_v4, %v1956_v9  ;;  %v1962_v36 = vadd.f32 %v1961_v27, %v4896_v51  ;;  %v1966_v7 = vadd.f32 %v1965_v30, %v4888_v45  ;;  %v1975_v9 = vpop.f32.mrf.mxu1 }
 0x287   : > { %v2465_v41 = vadd.f32 %v2464_v59, %v2463_v55  ;;  %v2256_v48 = vmul.f32 %v2144_v34, %v2144_v34  ;;  %v4948_v26 = vunpack.c.l.bf16 %v4947_v47  ;;  %v2404_v56 = vadd.f32 %v2403_v16, %v2249_v42 }
 0x288   : > { %v2300_v18 = vmul.f32 %v2188_v39, %v2188_v39  ;;  %v2257_v12 = vmul.f32 %v2145_v61, %v2145_v61  ;;  %v4949_v53 = vunpack.c.h.bf16 %v4945_v11  ;;  %v4951_v63 = vunpack.c.l.bf16 %v4950_v15  ;;  %v1977_v11 = vpop.f32.mrf.mxu1 }
 0x289   : > { %v2202_v0 = vsub.f32 %v4948_v26, %v2088_v54  ;;  %v2263_v27 = vmul.f32 %v2151_v28, %v2151_v28  ;;  %v1968_v30 = vadd.f32 %v1967_v31, %v4896_v51  ;;  %v1970_v34 = vadd.f32 %v1969_v57, %v4888_v45 }
 0x28a   : > { %v2152_v35 = vsub.f32 %v4949_v53, %v1958_v19  ;;  %v2158_v13 = vsub.f32 %v4951_v63, %v1960_v50  ;;  %v2466_v46 = vsel %vm1084_vm0, %v2300_v18, 0.0  ;;  %v2468_v54 = vsel %vm1084_vm0, %v2307_v2, 0.0 }
 0x28b   : > { %v2425_v62 = vadd.f32 %v2424_v60, %v2250_v21  ;;  %v4952_v16 = vunpack.c.h.bf16 %v4950_v15  ;;  %v4953_v61 = vunpack.c.l.bf16 %v4826_v58  ;;  %v2405_v55 = vadd.f32 %v2404_v56, %v2256_v48 }
 0x28c   : > { %v2314_v5 = vmul.f32 %v2202_v0, %v2202_v0  ;;  %v2467_v1 = vadd.f32 %v2466_v46, %v2465_v41  ;;  %v1972_v39 = vadd.f32 %v1971_v49, %v4896_v51  ;;  %v2264_v4 = vmul.f32 %v2152_v35, %v2152_v35  ;;  %v4955_v49 = vld [vmem:[#allocation9_spill] sm:$0xff] }
 0x28d   : > { %v2159_v42 = vsub.f32 %v4952_v16, %v1962_v36  ;;  %v2165_v19 = vsub.f32 %v4953_v61, %v1966_v7  ;;  %v2270_v31 = vmul.f32 %v2158_v13, %v2158_v13  ;;  %v2172_v28 = vsub.f32 %v374_v24, %v1970_v34  ;;  %v1979_v36 = vpop.f32.mrf.mxu1 }
 0x28e   : > { %v1976_v2 = vadd.f32 %v1975_v9, %v4888_v45  ;;  %v2426_v60 = vadd.f32 %v2425_v62, %v2257_v12  ;;  %v2406_v50 = vadd.f32 %v2405_v55, %v2263_v27  ;;  %v4954_v57 = vunpack.c.h.bf16 %v4826_v58 }
 0x28f   : > { %v1978_v59 = vadd.f32 %v1977_v11, %v4896_v51  ;;  %v2271_v7 = vmul.f32 %v2159_v42, %v2159_v42  ;;  %v2277_v41 = vmul.f32 %v2165_v19, %v2165_v19  ;;  %v1980_v47 = vadd.f32 %v1979_v36, %v4888_v45  ;;  %v1981_v18 = vpop.f32.mrf.mxu1 }
 0x290   : > { %v2166_v21 = vsub.f32 %v4954_v57, %v1968_v30  ;;  %v2179_v48 = vsub.f32 %v381_v8, %v1976_v2  ;;  %v2470_v26 = vsel %vm1084_vm0, %v2314_v5, 0.0  ;;  %v2469_v24 = vadd.f32 %v2468_v54, %v2467_v1 }
 0x291   : > { %v2173_v0 = vsub.f32 %v375_v40, %v1972_v39  ;;  %v4595_v58 = vrot.slane %v2485_v14, %v4955_v49  ;;  %v2427_v56 = vadd.f32 %v2426_v60, %v2264_v4  ;;  %v2407_v12 = vadd.f32 %v2406_v50, %v2270_v31  ;;  %v1985_v40 = vpop.f32.mrf.mxu1 }
 0x292   : > { %v2284_v53 = vmul.f32 %v2172_v28, %v2172_v28  ;;  %v2186_v8 = vsub.f32 %v388_v23, %v1980_v47  ;;  %v2278_v35 = vmul.f32 %v2166_v21, %v2166_v21  ;;  %v2180_v15 = vsub.f32 %v382_v20, %v1978_v59 }
 0x293   : > { %v1982_v37 = vadd.f32 %v1981_v18, %v4896_v51  ;;  %v4606_v25 = vrot.slane %v2486_v33, %v4955_v49  ;;  %v2428_v32 = vadd.f32 %v2427_v56, %v2271_v7  ;;  %v2408_v14 = vadd.f32 %v2407_v12, %v2277_v41  ;;  %v1987_v20 = vpop.f32.mrf.mxu1 }
 0x294   : > { %v2291_v63 = vmul.f32 %v2179_v48, %v2179_v48  ;;  %v1986_v13 = vadd.f32 %v1985_v40, %v4888_v45  ;;  %v2471_v46 = vadd.f32 %v2470_v26, %v2469_v24  ;;  %v2285_v23 = vmul.f32 %v2173_v0, %v2173_v0 }
 0x295   : > { %v2187_v43 = vsub.f32 %v389_v6, %v1982_v37  ;;  %v2516_v27 = vcombine.low %v4595_v58, %v4606_v25  ;;  %v2409_v30 = vadd.f32 %v2408_v14, %v2284_v53  ;;  %v2298_v34 = vmul.f32 %v2186_v8, %v2186_v8  ;;  %v1989_v54 = vpop.f32.mrf.mxu1 }
 0x296   : > { %v2193_v29 = vsub.f32 %v395_v22, %v1986_v13  ;;  %v1988_v10 = vadd.f32 %v1987_v20, %v4896_v51  ;;  %v2429_v33 = vadd.f32 %v2428_v32, %v2278_v35  ;;  %v2292_v9 = vmul.f32 %v2180_v15, %v2180_v15 }
 0x297   : > { %v2410_v62 = vadd.f32 %v2409_v30, %v2291_v63  ;;  %v1990_v6 = vadd.f32 %v1989_v54, %v4888_v45  ;;  %v2472_v42 = vrot.slane %v2471_v46, 4  ;;  %v2299_v19 = vmul.f32 %v2187_v43, %v2187_v43  ;;  %v1991_v5 = vpop.f32.mrf.mxu1 }
 0x298   : > { %v2305_v16 = vmul.f32 %v2193_v29, %v2193_v29  ;;  %v2194_v44 = vsub.f32 %v396_v3, %v1988_v10  ;;  %v2430_v61 = vadd.f32 %v2429_v33, %v2285_v23  ;;  %v403_v55 = vunpack.c.h.bf16 %v4532_v17 }
 0x299   : > { %v2411_v1 = vadd.f32 %v2410_v62, %v2298_v34  ;;  %v2200_v22 = vsub.f32 %v402_v52, %v1990_v6  ;;  %v1992_v4 = vadd.f32 %v1991_v5, %v4896_v51  ;;  %v2473_v38 = vadd.f32 %v2472_v42, %v2471_v46 }
 0x29a   : > { %v2431_v39 = vadd.f32 %v2430_v61, %v2292_v9  ;;  %v2306_v11 = vmul.f32 %v2194_v44, %v2194_v44  ;;  %v2524_v15 = vrot.slane %v2516_v27, %v4955_v49  ;;  %v4956_v40 = vlaneseq }
 0x29b   : > { %v2412_v31 = vadd.f32 %v2411_v1, %v2305_v16  ;;  %v2312_v28 = vmul.f32 %v2200_v22, %v2200_v22  ;;  %v2201_v2 = vsub.f32 %v403_v55, %v1992_v4  ;;  %v2474_v21 = vrot.slane %v2473_v38, 2 }
 0x29c   : > { %v2432_v3 = vadd.f32 %v2431_v39, %v2299_v19  ;;  %vm2536_vm2 = vcmp.lt.s32.totalorder %v4956_v40, 784 }
 0x29d   : > { %v2413_v45 = vadd.f32 %v2412_v31, %v2312_v28  ;;  %v2313_v50 = vmul.f32 %v2201_v2, %v2201_v2  ;;  %v2475_v52 = vadd.f32 %v2474_v21, %v2473_v38 }
 0x29e   : > { %v2433_v60 = vadd.f32 %v2432_v3, %v2306_v11 }
 0x29f   : > { %v2414_v57 = vrot.slane %v2413_v45, 4  ;;  %v2476_v47 = vrot.slane %v2475_v52, 1 }
 0x2a0   : > { %v2434_v59 = vadd.f32 %v2433_v60, %v2313_v50 }
 0x2a1   : > { %v2415_v36 = vadd.f32 %v2414_v57, %v2413_v45  ;;  %v2477_v56 = vadd.f32 %v2476_v47, %v2475_v52 }
 0x2a2   : > { %v2435_v7 = vrot.slane %v2434_v59, 4 }
 0x2a3   : > { %v2416_v17 = vrot.slane %v2415_v36, 2  ;;  %v2515_v8 = vrot.slane %v2477_v56, %v4955_v49 }
 0x2a4   : > { %v2436_v41 = vadd.f32 %v2435_v7, %v2434_v59 }
 0x2a5   : > { %v2417_v48 = vadd.f32 %v2416_v17, %v2415_v36 }
 0x2a6   : > { %v2437_v51 = vrot.slane %v2436_v41, 2 }
 0x2a7   : > { %v2418_v26 = vrot.slane %v2417_v48, 1 }
 0x2a8   : > { %v2438_v24 = vadd.f32 %v2437_v51, %v2436_v41 }
 0x2a9   : > { %v2419_v18 = vadd.f32 %v2418_v26, %v2417_v48 }
 0x2aa   : > { %v2439_v0 = vrot.slane %v2438_v24, 1 }
 0x2ac   : > { %v2440_v58 = vadd.f32 %v2439_v0, %v2438_v24 }
 0x2ae   : > { %v2487_v12 = vcombine.low %v2419_v18, %v2440_v58 }
 0x2b0   : > { %v2508_v53 = vrot.slane %v2487_v12, %v4955_v49 }
 0x2b2   : > { %v2517_v35 = vcombine.low %v2508_v53, %v2515_v8 }
 0x2b4   : > { %v2531_v37 = vrot.slane %v2517_v35, %v4955_v49 }
 0x2b6   : > { %v2532_v25 = vcombine.low %v2524_v15, %v2531_v37 }
 0x2b8   : > { %2538 = vst.msk [vmem:[%s220_s26] sm:$0x7f] %vm2536_vm2, %v2532_v25 }
 0x2b9   : > { %3244 = shalt.err (!%p3241_p3)
}
 0x2ba   : > { %s3245_s13 = scalar_lea.hbm %s2552_s8, 112  ;;  %s3249_s16 = scalar_lea.hbm %s4667_s5, 224 }
 0x2bb   : > { %p3246_p4 = scmp.ne.s32.totalorder %s2552_s8, %s3245_s13  ;;  %p3250_p9 = scmp.lt.s32.totalorder %s2552_s8, %s4667_s5 }
 0x2bc   : > { %p3251_p10 = scmp.lt.s32.totalorder %s3249_s16, %s3245_s13 }
 0x2bd   : > { %p3247_p7 = pnand %p3246_p4, %p3364_p5 }
 0x2be   : > { %p3252_p11 = por %p3251_p10, %p3250_p9 }
 0x2bf   : > { %p3248_p8 = pneg %p3247_p7 }
 0x2c1   : > { %p3253_p12 = pnand %p3252_p11, %p3248_p8 }
 0x2c3   : > { %3256 = shalt.err (!%p3253_p12)
}
 0x2c4   : > { %3034 = dma.vmem_to_hbm [thread:$0]  (%p3364_p5), %s2555_s25, 112, %s2552_s8, %s2540_s9  }
 0x2c5 PF: > { %p3040_p13 = scmp.ge.s32.totalorder %s3291_s21, 2  ;;  %s2566_s23 = sand.u32 1, %s3279_s18  }
 0x2c6   : > { %s2567_s26 = scalar_lea.sflag [#allocation3], %s2566_s23 }
 0x2c7   : > { %p3037_p0 = pnand %p3040_p13, %p3368_p6 }
 0x2c9   : > { %p3038_p1 = pneg %p3037_p0 }
 0x2cb   : > { %3274 = dma.done.wait (%p3038_p1), %s2567_s26, 112  }
 0x2cc   : > { %3276 = vsyncadd (%p3038_p1), %s2567_s26, 4294967184  ;;  %p15_p2 = scmp.ge.s32.totalorder %s3351_s24, 4   ;;  %s4957_s18 = smov %s3283_s19 }
 0x2cd   : > { %s4958_s19 = smov %s3287_s20  ;;  %s4959_s20 = smov %s3362_s27 }
 0x2ce   : > { %s4960_s21 = smov %s3351_s24  ;;  %17 = sbr.rel (!%p15_p2) target bundleno = 3 (0x3), region = 75 }
 0x2d3   :  { %2572 = vsyncpa [#allocation3], 1 }
 0x2d4   :  { %2574 = vsyncpa [#allocation3 + $0x1], 1 }

</bundles_post_ra>
